<compile_context>
chip_gen: v5e
topology: v5e:2x2
jax: 0.10.0
libtpu: 0.0.40
codegen_flags: <defaults>
</compile_context>

<pallas_src>
import functools

import jax
import jax.numpy as jnp
from jax import lax
from jax.experimental import pallas as pl
from jax.experimental.pallas import tpu as pltpu

BN_EPS = 1e-5  # PyTorch BatchNorm2d default eps


def _round_up(x, m):
    return (x + m - 1) // m * m


@functools.lru_cache(maxsize=1)
def _vmem_budget():
    """Per-generation VMEM limit (bytes). v7x has 64 MiB physical VMEM vs
    128 MiB on v5e/v6e, so derive from the device with a safe fallback."""
    cap = 64 * 1024 * 1024
    try:
        info = pltpu.get_tpu_info()
        cap = int(getattr(info, "vmem_capacity_bytes", cap)) or cap
    except Exception:
        pass
    return max(32 * 1024 * 1024, min(3 * cap // 4, 96 * 1024 * 1024))


# ---------------------------------------------------------------------------
# Pallas kernels
# ---------------------------------------------------------------------------

def _matmul_bn_relu_kernel(a_ref, w_ref, shift_ref, o_ref):
    """(tm,K)@(K,O) bf16 matmul with f32 accumulation; epilogue: +shift, ReLU.
    Weight block index is constant over the grid -> DMA'd once."""
    y = jnp.dot(a_ref[...], w_ref[...], preferred_element_type=jnp.float32)
    y = y + shift_ref[...]
    o_ref[...] = jnp.maximum(y, 0.0).astype(o_ref.dtype)


def _matmul_bn_add_relu_kernel(a_ref, w_ref, shift_ref, res_ref, o_ref):
    """Same as above plus a fused residual add before the final ReLU."""
    y = jnp.dot(a_ref[...], w_ref[...], preferred_element_type=jnp.float32)
    y = y + shift_ref[...] + res_ref[...].astype(jnp.float32)
    o_ref[...] = jnp.maximum(y, 0.0).astype(o_ref.dtype)


def _matmul_bn_relu_ktiled_kernel(a_ref, w_ref, shift_ref, o_ref, acc_ref):
    """Fallback K-tiled variant (only used if the full weight does not fit)."""
    k = pl.program_id(1)

    @pl.when(k == 0)
    def _():
        acc_ref[...] = jnp.zeros_like(acc_ref)

    acc_ref[...] += jnp.dot(a_ref[...], w_ref[...],
                            preferred_element_type=jnp.float32)

    @pl.when(k == pl.num_programs(1) - 1)
    def _():
        y = acc_ref[...] + shift_ref[...]
        o_ref[...] = jnp.maximum(y, 0.0).astype(o_ref.dtype)


def _matmul_bn_add_relu_ktiled_kernel(a_ref, w_ref, shift_ref, res_ref, o_ref,
                                      acc_ref):
    k = pl.program_id(1)

    @pl.when(k == 0)
    def _():
        acc_ref[...] = jnp.zeros_like(acc_ref)

    acc_ref[...] += jnp.dot(a_ref[...], w_ref[...],
                            preferred_element_type=jnp.float32)

    @pl.when(k == pl.num_programs(1) - 1)
    def _():
        y = acc_ref[...] + shift_ref[...] + res_ref[...].astype(jnp.float32)
        o_ref[...] = jnp.maximum(y, 0.0).astype(o_ref.dtype)


def _dilated_conv3x3_bn_relu_kernel(xp_ref, w_ref, shift_ref, o_ref, *,
                                    dil, hb, W, C):
    """3x3 dilated conv for one (image, row-block) as 3 matmuls with K=3C.

    xp_ref : (1, H+2d, W+2d, C)  spatially pre-padded plane (bf16), whole image
    w_ref  : (3, 3C, O)          per-kh weights, kw folded into contraction dim
    shift  : (1, O)              folded BN shift (f32)
    o_ref  : (1, hb, W, O)       output row block
    """
    d = dil
    O = w_ref.shape[-1]
    j = pl.program_id(1)
    row0 = j * hb
    if hb % 8 == 0:
        row0 = pl.multiple_of(row0, 8)

    # Input rows needed for output rows [j*hb, (j+1)*hb): free major-dim slice.
    rows = xp_ref[0, pl.ds(row0, hb + 2 * d), :, :]            # (hb+2d, Wp, C)

    # Build the 3 kw-shifted slabs once (3 sublane-offset copies total, reused
    # for all kh) and merge them on the channel/lane dim -> contraction K = 3C.
    stacked = jnp.concatenate(
        [rows[:, kw * d:kw * d + W, :] for kw in range(3)], axis=-1)

    acc = jnp.zeros((hb * W, O), jnp.float32)
    for kh in range(3):
        # Free major-dim slice; reshape is layout-free when W % 8 == 0.
        lhs = stacked[kh * d:kh * d + hb].reshape(hb * W, 3 * C)
        acc = acc + jnp.dot(lhs, w_ref[kh], preferred_element_type=jnp.float32)

    y = jnp.maximum(acc + shift_ref[...], 0.0)
    o_ref[...] = y.reshape(1, hb, W, O).astype(o_ref.dtype)


# ---------------------------------------------------------------------------
# Tile-size selection
# ---------------------------------------------------------------------------

def _choose_tm(M, K, O, has_res, out_bytes, budget, tm_target=512,
               with_acc=False):
    """Largest M tile from {512,...,8} that keeps >= 2 M tiles (when M allows)
    and fits the double-buffered VMEM footprint."""
    def foot(tm):
        f = (2 * tm * K * 2           # activation block (bf16, double buffered)
             + 2 * K * O * 2          # weight (bf16)
             + 2 * tm * O * out_bytes  # output block
             + 2 * O * 4)             # shift
        if has_res:
            f += 2 * tm * O * 2       # bf16 residual block
        if with_acc:
            f += tm * O * 4           # f32 accumulator scratch
        return f

    m8 = _round_up(max(M, 1), 8)
    for tm in (512, 256, 128, 64, 32, 16, 8):
        if tm > tm_target or tm > m8:
            continue
        if M >= 2 * tm and foot(tm) <= budget:
            return tm
    return min(m8, 8)


def _choose_hb(N, H, W, C, O, d, budget):
    """Largest divisor of H whose per-step footprint fits; prefer >= 2 total
    grid steps (pipeline depth / dual-TC) when N is small."""
    Hp, Wp = H + 2 * d, W + 2 * d
    base = 2 * Hp * Wp * C * 2 + 2 * 3 * 3 * C * O * 2 + 2 * O * 4

    def foot(hb):
        return (hb * W * O * 4                     # f32 accumulator
                + (hb + 2 * d) * Wp * C * 2        # loaded rows (bf16)
                + (hb + 2 * d) * W * 3 * C * 2     # kw-stacked operand (bf16)
                + 2 * hb * W * O * 2)              # output block (bf16)

    divs = [h for h in range(H, 0, -1) if H % h == 0]
    fitting = [hb for hb in divs if base + foot(hb) <= budget]
    if not fitting:
        return 1
    for hb in fitting:
        if N * (H // hb) >= 2:
            return hb
    return fitting[-1]


# ---------------------------------------------------------------------------
# pallas_call wrappers
# ---------------------------------------------------------------------------

def fused_matmul_bn_relu(a, w, shift, residual=None, *, out_dtype=jnp.bfloat16,
                         tm_target=512):
    """1x1-conv-as-matmul + folded BN shift (+ optional residual) + ReLU.

    a: (M, K) bf16, w: (K, O) bf16 with BN scale pre-folded, shift: (1, O) f32.
    """
    M, K = a.shape
    Kw, O = w.shape
    assert K == Kw
    vmem_limit = _vmem_budget()
    tile_budget = int(vmem_limit * 0.7)
    out_bytes = jnp.dtype(out_dtype).itemsize

    # Fast path: keep the whole (K, O) weight resident (constant block index ->
    # single DMA) whenever it fits comfortably.  True for all Bottleneck sizes.
    full_weight = (4 * K * O) <= (tile_budget // 2)

    if full_weight:
        tm = _choose_tm(M, K, O, residual is not None, out_bytes, tile_budget,
                        tm_target=tm_target, with_acc=False)
        m_pad = _round_up(M, tm)
        if m_pad != M:
            a = jnp.pad(a, ((0, m_pad - M), (0, 0)))
            if residual is not None:
                residual = jnp.pad(residual, ((0, m_pad - M), (0, 0)))

        in_specs = [pl.BlockSpec((tm, K), lambda i: (i, 0)),
                    pl.BlockSpec((K, O), lambda i: (0, 0)),
                    pl.BlockSpec((1, O), lambda i: (0, 0))]
        operands = [a, w, shift]
        kernel = _matmul_bn_relu_kernel
        if residual is not None:
            in_specs.append(pl.BlockSpec((tm, O), lambda i: (i, 0)))
            operands.append(residual)
            kernel = _matmul_bn_add_relu_kernel

        out = pl.pallas_call(
            kernel,
            out_shape=jax.ShapeDtypeStruct((m_pad, O), out_dtype),
            grid_spec=pltpu.PrefetchScalarGridSpec(
                num_scalar_prefetch=0,
                grid=(m_pad // tm,),
                in_specs=in_specs,
                out_specs=pl.BlockSpec((tm, O), lambda i: (i, 0))),
            compiler_params=pltpu.CompilerParams(
                dimension_semantics=("parallel",),
                vmem_limit_bytes=vmem_limit),
        )(*operands)
        return out[:M] if m_pad != M else out

    # Fallback: hardened K-tiling (pad K to a multiple of tk instead of tk=K).
    tk = 512
    k_pad = _round_up(K, tk)
    if k_pad != K:
        a = jnp.pad(a, ((0, 0), (0, k_pad - K)))
        w = jnp.pad(w, ((0, k_pad - K), (0, 0)))
    tm = _choose_tm(M, tk, O, residual is not None, out_bytes, tile_budget,
                    tm_target=tm_target, with_acc=True)
    m_pad = _round_up(M, tm)
    if m_pad != M:
        a = jnp.pad(a, ((0, m_pad - M), (0, 0)))
        if residual is not None:
            residual = jnp.pad(residual, ((0, m_pad - M), (0, 0)))

    in_specs = [pl.BlockSpec((tm, tk), lambda i, k: (i, k)),
                pl.BlockSpec((tk, O), lambda i, k: (k, 0)),
                pl.BlockSpec((1, O), lambda i, k: (0, 0))]
    operands = [a, w, shift]
    kernel = _matmul_bn_relu_ktiled_kernel
    if residual is not None:
        in_specs.append(pl.BlockSpec((tm, O), lambda i, k: (i, 0)))
        operands.append(residual)
        kernel = _matmul_bn_add_relu_ktiled_kernel

    out = pl.pallas_call(
        kernel,
        out_shape=jax.ShapeDtypeStruct((m_pad, O), out_dtype),
        grid_spec=pltpu.PrefetchScalarGridSpec(
            num_scalar_prefetch=0,
            grid=(m_pad // tm, k_pad // tk),
            in_specs=in_specs,
            out_specs=pl.BlockSpec((tm, O), lambda i, k: (i, 0)),
            scratch_shapes=[pltpu.VMEM((tm, O), jnp.float32)]),
        compiler_params=pltpu.CompilerParams(
            dimension_semantics=("parallel", "arbitrary"),
            vmem_limit_bytes=vmem_limit),
    )(*operands)
    return out[:M] if m_pad != M else out


def dilated_conv3x3_bn_relu(x_nhwc, w_taps, shift, dilation, *,
                            out_dtype=jnp.bfloat16):
    """3x3 dilated conv (stride 1, padding=dilation) + folded BN + ReLU.

    w_taps: (3, 3C, O) with the kw taps folded into the contraction dim.
    """
    N, H, W, C = x_nhwc.shape
    O = w_taps.shape[-1]
    d = dilation
    # Zero-pad spatially once in plain JAX (no im2col blowup); the kw shifts
    # are built in VMEM inside the kernel.
    xp = jnp.pad(x_nhwc, ((0, 0), (d, d), (d, d), (0, 0)))
    Hp, Wp = H + 2 * d, W + 2 * d

    vmem_limit = _vmem_budget()
    hb = _choose_hb(N, H, W, C, O, d, int(vmem_limit * 0.7))
    n_hblk = H // hb

    kernel = functools.partial(_dilated_conv3x3_bn_relu_kernel,
                               dil=d, hb=hb, W=W, C=C)
    return pl.pallas_call(
        kernel,
        out_shape=jax.ShapeDtypeStruct((N, H, W, O), out_dtype),
        grid_spec=pltpu.PrefetchScalarGridSpec(
            num_scalar_prefetch=0,
            grid=(N, n_hblk),
            in_specs=[
                # Whole padded plane per image; constant block index across the
                # row axis -> DMA'd once per image, re-used by all row blocks.
                pl.BlockSpec((1, Hp, Wp, C), lambda n, j: (n, 0, 0, 0)),
                pl.BlockSpec((3, 3 * C, O), lambda n, j: (0, 0, 0)),
                pl.BlockSpec((1, O), lambda n, j: (0, 0)),
            ],
            out_specs=pl.BlockSpec((1, hb, W, O), lambda n, j: (n, j, 0, 0)),
        ),
        compiler_params=pltpu.CompilerParams(
            dimension_semantics=("parallel", "arbitrary"),
            vmem_limit_bytes=vmem_limit),
    )(xp, w_taps, shift)


# ---------------------------------------------------------------------------
# Parameter folding (plain JAX, host side)
# ---------------------------------------------------------------------------

def _bn_scale_shift(bn):
    gamma, beta, mean, var = bn
    scale = gamma / jnp.sqrt(var + BN_EPS)
    shift = beta - mean * scale
    return scale, shift


def fold_1x1_conv_bn(w_oihw, bn):
    """(O,C,1,1) weight + eval BN -> bf16 (C,O) scale-folded weight, f32 (1,O) shift."""
    scale, shift = _bn_scale_shift(bn)
    w = w_oihw[:, :, 0, 0].T * scale[None, :]
    return w.astype(jnp.bfloat16), shift[None, :].astype(jnp.float32)


def fold_3x3_conv_bn(w_oihw, bn):
    """(O,C,3,3) weight + eval BN -> bf16 (3, 3C, O) per-kh weights (kw folded
    into the contraction dim, kw-major / c-minor), f32 (1,O) shift."""
    scale, shift = _bn_scale_shift(bn)
    O, C, KH, KW = w_oihw.shape
    w = jnp.transpose(w_oihw, (2, 3, 1, 0)).reshape(KH, KW * C, O) * scale
    return w.astype(jnp.bfloat16), shift[None, :].astype(jnp.float32)


# ---------------------------------------------------------------------------
# Bottleneck forward (eval mode, downsample=None)
# ---------------------------------------------------------------------------

def bottleneck_forward(x_nchw, params, *, stride=1, dilation=1):
    if stride != 1:
        # TODO(synk): stride>1 / downsample residual projection not implemented.
        raise NotImplementedError("only stride=1, downsample=None is supported")

    x = jnp.transpose(x_nchw, (0, 2, 3, 1))                     # NCHW -> NHWC
    N, H, W, Cin = x.shape
    M = N * H * W
    # Single bf16 cast of x: conv1 input AND conv3 residual (halves residual
    # HBM traffic vs. carrying an extra f32 copy).
    x_bf = x.reshape(M, Cin).astype(jnp.bfloat16)

    # conv1 (1x1) + bn1 + relu
    w1, sh1 = fold_1x1_conv_bn(params['w1'], params['bn1'])
    P = w1.shape[1]
    y1 = fused_matmul_bn_relu(x_bf, w1, sh1, out_dtype=jnp.bfloat16)
    y1 = y1.reshape(N, H, W, P)

    # conv2 (3x3, dilation, padding=dilation) + bn2 + relu
    w2, sh2 = fold_3x3_conv_bn(params['w2'], params['bn2'])
    y2 = dilated_conv3x3_bn_relu(y1, w2, sh2, dilation, out_dtype=jnp.bfloat16)

    # conv3 (1x1, P -> 4P) + bn3, fused residual add + final relu
    w3, sh3 = fold_1x1_conv_bn(params['w3'], params['bn3'])
    Pout = w3.shape[1]
    assert Cin == Pout, "identity residual requires inplanes == planes * expansion"
    y3 = fused_matmul_bn_relu(y2.reshape(M, P), w3, sh3, residual=x_bf,
                              out_dtype=jnp.bfloat16)

    # bf16 NHWC -> f32 NCHW: the transpose and the f32 convert fuse into one
    # pass (reads 2 B/elem, writes 4 B/elem) instead of an f32->f32 round trip.
    out = jnp.transpose(y3.reshape(N, H, W, Pout), (0, 3, 1, 2))
    return out.astype(jnp.float32)


# ---------------------------------------------------------------------------
# Deterministic synthetic parameters (PyTorch shapes)
# ---------------------------------------------------------------------------

def init_params(key, inplanes, planes, expansion=4):
    ks = jax.random.split(key, 6)

    def conv_w(k, o, c, kh, kw):
        return jax.random.normal(k, (o, c, kh, kw), jnp.float32) * 0.08

    def bn(k, c):
        k1, k2, k3, k4 = jax.random.split(k, 4)
        gamma = jax.random.uniform(k1, (c,), jnp.float32, 0.7, 1.3)
        beta = jax.random.normal(k2, (c,), jnp.float32) * 0.1
        mean = jax.random.normal(k3, (c,), jnp.float32) * 0.1
        var = jax.random.uniform(k4, (c,), jnp.float32, 0.7, 1.3)
        return gamma, beta, mean, var

    return {
        'w1': conv_w(ks[0], planes, inplanes, 1, 1),
        'w2': conv_w(ks[1], planes, planes, 3, 3),
        'w3': conv_w(ks[2], planes * expansion, planes, 1, 1),
        'bn1': bn(ks[3], planes),
        'bn2': bn(ks[4], planes),
        'bn3': bn(ks[5], planes * expansion),
    }


# ---------------------------------------------------------------------------
# Pure-JAX reference (correctness check only)
# ---------------------------------------------------------------------------

def bottleneck_reference(x_nchw, params, *, stride=1, dilation=1):
    x = jnp.transpose(x_nchw, (0, 2, 3, 1)).astype(jnp.float32)
    dn = ('NHWC', 'HWIO', 'NHWC')

    def conv(inp, w_oihw, s, pad, dil):
        w = jnp.transpose(w_oihw, (2, 3, 1, 0))
        return lax.conv_general_dilated(
            inp, w, (s, s), ((pad, pad), (pad, pad)),
            rhs_dilation=(dil, dil), dimension_numbers=dn,
            precision=lax.Precision.HIGHEST)

    def bn(y, p):
        gamma, beta, mean, var = p
        s = gamma / jnp.sqrt(var + BN_EPS)
        return y * s + (beta - mean * s)

    out = jnp.maximum(bn(conv(x, params['w1'], stride, 0, 1), params['bn1']), 0.0)
    out = jnp.maximum(bn(conv(out, params['w2'], 1, dilation, dilation),
                         params['bn2']), 0.0)
    out = bn(conv(out, params['w3'], 1, 0, 1), params['bn3'])
    out = jnp.maximum(out + x, 0.0)            # downsample=None -> identity residual
    return jnp.transpose(out, (0, 3, 1, 2))


if __name__ == "__main__":
    key = jax.random.PRNGKey(0)
    kx, kp = jax.random.split(key)

    N, INPLANES, PLANES, H, W = 2, 32, 8, 16, 16
    DILATION = 2
    x = jax.random.normal(kx, (N, INPLANES, H, W), jnp.float32)
    params = init_params(kp, INPLANES, PLANES)

    fwd = jax.jit(functools.partial(bottleneck_forward, stride=1, dilation=DILATION))
    out = jax.block_until_ready(fwd(x, params))
    assert out.shape == (N, 4 * PLANES, H, W), out.shape

    ref = bottleneck_reference(x, params, stride=1, dilation=DILATION)
    max_err = float(jnp.max(jnp.abs(out - ref)))
    assert jnp.allclose(out, ref, atol=3e-2, rtol=3e-2), f"max abs err {max_err}"

    print("KERNEL_OK")
</pallas_src>

<mosaic_0001>
module attributes {stable_mosaic.version = 11 : i64} {
  func.func @_dilated_conv3x3_bn_relu_kernel(%arg0: i32, %arg1: i32, %arg2: memref<1x20x20x8xbf16, #tpu.memory_space<vmem>>, %arg3: memref<3x24x8xbf16, #tpu.memory_space<vmem>>, %arg4: memref<1x8xf32, #tpu.memory_space<vmem>>, %arg5: memref<1x16x16x8xbf16, #tpu.memory_space<vmem>>) attributes {dimension_semantics = [#tpu.dimension_semantics<parallel>, #tpu.dimension_semantics<arbitrary>], iteration_bounds = array<i64: 2, 1>, scalar_prefetch = 0 : i64, scratch_operands = 0 : i64, tpu.core_type = #tpu.core_type<tc>, window_params = [{transform_indices = @transform_0, window_bounds = array<i64: 1, 20, 20, 8>}, {pipeline_mode = #tpu.pipeline_mode<synchronous>, transform_indices = @transform_1, window_bounds = array<i64: 3, 24, 8>}, {pipeline_mode = #tpu.pipeline_mode<synchronous>, transform_indices = @transform_2, window_bounds = array<i64: 1, 8>}, {transform_indices = @transform_3, window_bounds = array<i64: 1, 16, 16, 8>}]} {
    %c16_i32 = arith.constant 16 : i32
    %0 = arith.muli %arg1, %c16_i32 : i32
    %1 = tpu.assume_multiple %0, 8 : i32
    %c0 = arith.constant 0 : index
    %2 = arith.index_cast %1 : i32 to index
    %c0_0 = arith.constant 0 : index
    %c0_1 = arith.constant 0 : index
    %3 = vector.load %arg2[%c0, %2, %c0_0, %c0_1] : memref<1x20x20x8xbf16, #tpu.memory_space<vmem>>, vector<1x20x20x8xbf16>
    %4 = vector.shape_cast %3 : vector<1x20x20x8xbf16> to vector<20x20x8xbf16>
    %5 = vector.extract_strided_slice %4 {offsets = [0, 0, 0], sizes = [20, 16, 8], strides = [1, 1, 1]} : vector<20x20x8xbf16> to vector<20x16x8xbf16>
    %6 = vector.extract_strided_slice %4 {offsets = [0, 2, 0], sizes = [20, 16, 8], strides = [1, 1, 1]} : vector<20x20x8xbf16> to vector<20x16x8xbf16>
    %7 = vector.extract_strided_slice %4 {offsets = [0, 4, 0], sizes = [20, 16, 8], strides = [1, 1, 1]} : vector<20x20x8xbf16> to vector<20x16x8xbf16>
    %8 = tpu.concatenate %5, %6, %7 in 2 : vector<20x16x8xbf16>, vector<20x16x8xbf16>, vector<20x16x8xbf16> -> vector<20x16x24xbf16>
    %cst = arith.constant 0.000000e+00 : f32
    %9 = vector.broadcast %cst : f32 to vector<256x8xf32>
    %10 = vector.extract_strided_slice %8 {offsets = [0, 0, 0], sizes = [16, 16, 24], strides = [1, 1, 1]} : vector<20x16x24xbf16> to vector<16x16x24xbf16>
    %11 = vector.shape_cast %10 : vector<16x16x24xbf16> to vector<256x24xbf16>
    %c0_2 = arith.constant 0 : index
    %c0_3 = arith.constant 0 : index
    %c0_4 = arith.constant 0 : index
    %12 = vector.load %arg3[%c0_2, %c0_3, %c0_4] : memref<3x24x8xbf16, #tpu.memory_space<vmem>>, vector<1x24x8xbf16>
    %13 = vector.shape_cast %12 : vector<1x24x8xbf16> to vector<24x8xbf16>
    %cst_5 = arith.constant dense<0.000000e+00> : vector<256x8xf32>
    %14 = tpu.matmul %11, %13, %cst_5 {dimension_numbers = #tpu.dot_dimension_numbers<[1], [0], [0], [1], [0, 0, 1, 1], [], []>} : vector<256x24xbf16>, vector<24x8xbf16>, vector<256x8xf32> -> vector<256x8xf32>
    %15 = arith.addf %9, %14 : vector<256x8xf32>
    %16 = vector.extract_strided_slice %8 {offsets = [2, 0, 0], sizes = [16, 16, 24], strides = [1, 1, 1]} : vector<20x16x24xbf16> to vector<16x16x24xbf16>
    %17 = vector.shape_cast %16 : vector<16x16x24xbf16> to vector<256x24xbf16>
    %c1 = arith.constant 1 : index
    %c0_6 = arith.constant 0 : index
    %c0_7 = arith.constant 0 : index
    %18 = vector.load %arg3[%c1, %c0_6, %c0_7] : memref<3x24x8xbf16, #tpu.memory_space<vmem>>, vector<1x24x8xbf16>
    %19 = vector.shape_cast %18 : vector<1x24x8xbf16> to vector<24x8xbf16>
    %cst_8 = arith.constant dense<0.000000e+00> : vector<256x8xf32>
    %20 = tpu.matmul %17, %19, %cst_8 {dimension_numbers = #tpu.dot_dimension_numbers<[1], [0], [0], [1], [0, 0, 1, 1], [], []>} : vector<256x24xbf16>, vector<24x8xbf16>, vector<256x8xf32> -> vector<256x8xf32>
    %21 = arith.addf %15, %20 : vector<256x8xf32>
    %22 = vector.extract_strided_slice %8 {offsets = [4, 0, 0], sizes = [16, 16, 24], strides = [1, 1, 1]} : vector<20x16x24xbf16> to vector<16x16x24xbf16>
    %23 = vector.shape_cast %22 : vector<16x16x24xbf16> to vector<256x24xbf16>
    %c2 = arith.constant 2 : index
    %c0_9 = arith.constant 0 : index
    %c0_10 = arith.constant 0 : index
    %24 = vector.load %arg3[%c2, %c0_9, %c0_10] : memref<3x24x8xbf16, #tpu.memory_space<vmem>>, vector<1x24x8xbf16>
    %25 = vector.shape_cast %24 : vector<1x24x8xbf16> to vector<24x8xbf16>
    %cst_11 = arith.constant dense<0.000000e+00> : vector<256x8xf32>
    %26 = tpu.matmul %23, %25, %cst_11 {dimension_numbers = #tpu.dot_dimension_numbers<[1], [0], [0], [1], [0, 0, 1, 1], [], []>} : vector<256x24xbf16>, vector<24x8xbf16>, vector<256x8xf32> -> vector<256x8xf32>
    %27 = arith.addf %21, %26 : vector<256x8xf32>
    %c0_12 = arith.constant 0 : index
    %c0_13 = arith.constant 0 : index
    %28 = vector.load %arg4[%c0_12, %c0_13] : memref<1x8xf32, #tpu.memory_space<vmem>>, vector<1x8xf32>
    %29 = vector.broadcast %28 : vector<1x8xf32> to vector<256x8xf32>
    %30 = arith.addf %27, %29 : vector<256x8xf32>
    %cst_14 = arith.constant 0.000000e+00 : f32
    %31 = vector.broadcast %cst_14 : f32 to vector<256x8xf32>
    %32 = arith.maximumf %30, %31 : vector<256x8xf32>
    %33 = vector.shape_cast %32 : vector<256x8xf32> to vector<1x16x16x8xf32>
    %34 = arith.truncf %33 : vector<1x16x16x8xf32> to vector<1x16x16x8xbf16>
    %c0_15 = arith.constant 0 : index
    %c0_16 = arith.constant 0 : index
    %c0_17 = arith.constant 0 : index
    %c0_18 = arith.constant 0 : index
    %35 = vector.load %arg5[%c0_15, %c0_16, %c0_17, %c0_18] : memref<1x16x16x8xbf16, #tpu.memory_space<vmem>>, vector<1x16x16x8xbf16>
    tpu.vector_store %arg5[%c0_15, %c0_16, %c0_17, %c0_18], %34 {strides = array<i32>} : memref<1x16x16x8xbf16, #tpu.memory_space<vmem>>, vector<1x16x16x8xbf16>,
    return
  }
  func.func @transform_0(%arg0: i32, %arg1: i32) -> (i32, i32, i32, i32) {
    %c0_i32 = arith.constant 0 : i32
    %c0_i32_0 = arith.constant 0 : i32
    %c0_i32_1 = arith.constant 0 : i32
    %c0_i32_2 = arith.constant 0 : i32
    return %arg0, %c0_i32, %c0_i32_0, %c0_i32_1 : i32, i32, i32, i32
  }
  func.func @transform_1(%arg0: i32, %arg1: i32) -> (i32, i32, i32) {
    %c0_i32 = arith.constant 0 : i32
    %c0_i32_0 = arith.constant 0 : i32
    %c0_i32_1 = arith.constant 0 : i32
    %c0_i32_2 = arith.constant 0 : i32
    return %c0_i32, %c0_i32_0, %c0_i32_1 : i32, i32, i32
  }
  func.func @transform_2(%arg0: i32, %arg1: i32) -> (i32, i32) {
    %c0_i32 = arith.constant 0 : i32
    %c0_i32_0 = arith.constant 0 : i32
    %c0_i32_1 = arith.constant 0 : i32
    return %c0_i32, %c0_i32_0 : i32, i32
  }
  func.func @transform_3(%arg0: i32, %arg1: i32) -> (i32, i32, i32, i32) {
    %c0_i32 = arith.constant 0 : i32
    %c0_i32_0 = arith.constant 0 : i32
    %c0_i32_1 = arith.constant 0 : i32
    return %arg0, %arg1, %c0_i32, %c0_i32_0 : i32, i32, i32, i32
  }
}

module attributes {stable_mosaic.version = 11 : i64} {
  func.func @_matmul_bn_relu_kernel(%arg0: i32, %arg1: memref<256x32xbf16, #tpu.memory_space<vmem>>, %arg2: memref<32x8xbf16, #tpu.memory_space<vmem>>, %arg3: memref<1x8xf32, #tpu.memory_space<vmem>>, %arg4: memref<256x8xbf16, #tpu.memory_space<vmem>>) attributes {dimension_semantics = [#tpu.dimension_semantics<parallel>], iteration_bounds = array<i64: 2>, scalar_prefetch = 0 : i64, scratch_operands = 0 : i64, tpu.core_type = #tpu.core_type<tc>, window_params = [{transform_indices = @transform_0, window_bounds = array<i64: 256, 32>}, {pipeline_mode = #tpu.pipeline_mode<synchronous>, transform_indices = @transform_1, window_bounds = array<i64: 32, 8>}, {pipeline_mode = #tpu.pipeline_mode<synchronous>, transform_indices = @transform_2, window_bounds = array<i64: 1, 8>}, {transform_indices = @transform_3, window_bounds = array<i64: 256, 8>}]} {
    %c0 = arith.constant 0 : index
    %c0_0 = arith.constant 0 : index
    %0 = vector.load %arg1[%c0, %c0_0] : memref<256x32xbf16, #tpu.memory_space<vmem>>, vector<256x32xbf16>
    %c0_1 = arith.constant 0 : index
    %c0_2 = arith.constant 0 : index
    %1 = vector.load %arg2[%c0_1, %c0_2] : memref<32x8xbf16, #tpu.memory_space<vmem>>, vector<32x8xbf16>
    %cst = arith.constant dense<0.000000e+00> : vector<256x8xf32>
    %2 = tpu.matmul %0, %1, %cst {dimension_numbers = #tpu.dot_dimension_numbers<[1], [0], [0], [1], [0, 0, 1, 1], [], []>} : vector<256x32xbf16>, vector<32x8xbf16>, vector<256x8xf32> -> vector<256x8xf32>
    %c0_3 = arith.constant 0 : index
    %c0_4 = arith.constant 0 : index
    %3 = vector.load %arg3[%c0_3, %c0_4] : memref<1x8xf32, #tpu.memory_space<vmem>>, vector<1x8xf32>
    %4 = vector.broadcast %3 : vector<1x8xf32> to vector<256x8xf32>
    %5 = arith.addf %2, %4 : vector<256x8xf32>
    %cst_5 = arith.constant 0.000000e+00 : f32
    %6 = vector.broadcast %cst_5 : f32 to vector<256x8xf32>
    %7 = arith.maximumf %5, %6 : vector<256x8xf32>
    %8 = arith.truncf %7 : vector<256x8xf32> to vector<256x8xbf16>
    %c0_6 = arith.constant 0 : index
    %c0_7 = arith.constant 0 : index
    %9 = vector.load %arg4[%c0_6, %c0_7] : memref<256x8xbf16, #tpu.memory_space<vmem>>, vector<256x8xbf16>
    tpu.vector_store %arg4[%c0_6, %c0_7], %8 {strides = array<i32>} : memref<256x8xbf16, #tpu.memory_space<vmem>>, vector<256x8xbf16>,
    return
  }
  func.func @transform_0(%arg0: i32) -> (i32, i32) {
    %c0_i32 = arith.constant 0 : i32
    %c0_i32_0 = arith.constant 0 : i32
    return %arg0, %c0_i32 : i32, i32
  }
  func.func @transform_1(%arg0: i32) -> (i32, i32) {
    %c0_i32 = arith.constant 0 : i32
    %c0_i32_0 = arith.constant 0 : i32
    %c0_i32_1 = arith.constant 0 : i32
    return %c0_i32, %c0_i32_0 : i32, i32
  }
  func.func @transform_2(%arg0: i32) -> (i32, i32) {
    %c0_i32 = arith.constant 0 : i32
    %c0_i32_0 = arith.constant 0 : i32
    %c0_i32_1 = arith.constant 0 : i32
    return %c0_i32, %c0_i32_0 : i32, i32
  }
  func.func @transform_3(%arg0: i32) -> (i32, i32) {
    %c0_i32 = arith.constant 0 : i32
    %c0_i32_0 = arith.constant 0 : i32
    return %arg0, %c0_i32 : i32, i32
  }
}

module attributes {stable_mosaic.version = 11 : i64} {
  func.func @_matmul_bn_add_relu_kernel(%arg0: i32, %arg1: memref<256x8xbf16, #tpu.memory_space<vmem>>, %arg2: memref<8x32xbf16, #tpu.memory_space<vmem>>, %arg3: memref<1x32xf32, #tpu.memory_space<vmem>>, %arg4: memref<256x32xbf16, #tpu.memory_space<vmem>>, %arg5: memref<256x32xbf16, #tpu.memory_space<vmem>>) attributes {dimension_semantics = [#tpu.dimension_semantics<parallel>], iteration_bounds = array<i64: 2>, scalar_prefetch = 0 : i64, scratch_operands = 0 : i64, tpu.core_type = #tpu.core_type<tc>, window_params = [{transform_indices = @transform_0, window_bounds = array<i64: 256, 8>}, {pipeline_mode = #tpu.pipeline_mode<synchronous>, transform_indices = @transform_1, window_bounds = array<i64: 8, 32>}, {pipeline_mode = #tpu.pipeline_mode<synchronous>, transform_indices = @transform_2, window_bounds = array<i64: 1, 32>}, {transform_indices = @transform_3, window_bounds = array<i64: 256, 32>}, {transform_indices = @transform_4, window_bounds = array<i64: 256, 32>}]} {
    %c0 = arith.constant 0 : index
    %c0_0 = arith.constant 0 : index
    %0 = vector.load %arg1[%c0, %c0_0] : memref<256x8xbf16, #tpu.memory_space<vmem>>, vector<256x8xbf16>
    %c0_1 = arith.constant 0 : index
    %c0_2 = arith.constant 0 : index
    %1 = vector.load %arg2[%c0_1, %c0_2] : memref<8x32xbf16, #tpu.memory_space<vmem>>, vector<8x32xbf16>
    %cst = arith.constant dense<0.000000e+00> : vector<256x32xf32>
    %2 = tpu.matmul %0, %1, %cst {dimension_numbers = #tpu.dot_dimension_numbers<[1], [0], [0], [1], [0, 0, 1, 1], [], []>} : vector<256x8xbf16>, vector<8x32xbf16>, vector<256x32xf32> -> vector<256x32xf32>
    %c0_3 = arith.constant 0 : index
    %c0_4 = arith.constant 0 : index
    %3 = vector.load %arg3[%c0_3, %c0_4] : memref<1x32xf32, #tpu.memory_space<vmem>>, vector<1x32xf32>
    %4 = vector.broadcast %3 : vector<1x32xf32> to vector<256x32xf32>
    %5 = arith.addf %2, %4 : vector<256x32xf32>
    %c0_5 = arith.constant 0 : index
    %c0_6 = arith.constant 0 : index
    %6 = vector.load %arg4[%c0_5, %c0_6] : memref<256x32xbf16, #tpu.memory_space<vmem>>, vector<256x32xbf16>
    %7 = arith.extf %6 : vector<256x32xbf16> to vector<256x32xf32>
    %8 = arith.addf %5, %7 : vector<256x32xf32>
    %cst_7 = arith.constant 0.000000e+00 : f32
    %9 = vector.broadcast %cst_7 : f32 to vector<256x32xf32>
    %10 = arith.maximumf %8, %9 : vector<256x32xf32>
    %11 = arith.truncf %10 : vector<256x32xf32> to vector<256x32xbf16>
    %c0_8 = arith.constant 0 : index
    %c0_9 = arith.constant 0 : index
    %12 = vector.load %arg5[%c0_8, %c0_9] : memref<256x32xbf16, #tpu.memory_space<vmem>>, vector<256x32xbf16>
    tpu.vector_store %arg5[%c0_8, %c0_9], %11 {strides = array<i32>} : memref<256x32xbf16, #tpu.memory_space<vmem>>, vector<256x32xbf16>,
    return
  }
  func.func @transform_0(%arg0: i32) -> (i32, i32) {
    %c0_i32 = arith.constant 0 : i32
    %c0_i32_0 = arith.constant 0 : i32
    return %arg0, %c0_i32 : i32, i32
  }
  func.func @transform_1(%arg0: i32) -> (i32, i32) {
    %c0_i32 = arith.constant 0 : i32
    %c0_i32_0 = arith.constant 0 : i32
    %c0_i32_1 = arith.constant 0 : i32
    return %c0_i32, %c0_i32_0 : i32, i32
  }
  func.func @transform_2(%arg0: i32) -> (i32, i32) {
    %c0_i32 = arith.constant 0 : i32
    %c0_i32_0 = arith.constant 0 : i32
    %c0_i32_1 = arith.constant 0 : i32
    return %c0_i32, %c0_i32_0 : i32, i32
  }
  func.func @transform_3(%arg0: i32) -> (i32, i32) {
    %c0_i32 = arith.constant 0 : i32
    %c0_i32_0 = arith.constant 0 : i32
    return %arg0, %c0_i32 : i32, i32
  }
  func.func @transform_4(%arg0: i32) -> (i32, i32) {
    %c0_i32 = arith.constant 0 : i32
    %c0_i32_0 = arith.constant 0 : i32
    return %arg0, %c0_i32 : i32, i32
  }
}

</mosaic_0001>

<bundles_post_ra>
// kernel: bottleneck_forward.3
= control target key start
LH: loop header
LB: loop body
LE: loop exit
PB: predicated region body
PF: predicated region fallthrough
CT: control target
= control target key end

     0   :  { %s758_s12 = smov 0   ;;  %s925_s0 = inlined_call_operand.vmem [shape: bf16[512,32], index: 0, kind: input, shape index: {}]   ;;  %s926_s1 = inlined_call_operand.vmem [shape: bf16[32,8], index: 1, kind: input, shape index: {}]   ;;  %s927_s2 = inlined_call_operand.vmem [shape: f32[1,8], index: 2, kind: input, shape index: {}]   ;;  %s928_s3 = inlined_call_operand.vmem [shape: bf16[512,8], index: 3, kind: output, shape index: {}]  }
   0x1 LB: > { %s598_s13 = sadd.s32 4294967295, %s736_s12   ;;  %p602_p0 = scmp.ge.s32.totalorder %s736_s12, 1  ;;  %s736_s12 = sphi %s758_s12, %s13_s12  }
   0x2   : > { %p138_p1 = scmp.lt.s32.totalorder %s736_s12, 3 }
   0x4   : > { %p139_p2 = pnand %p602_p0, %p138_p1 }
   0x5   : > { %s603_s16 = sshll.u32 (!%p139_p2), %s598_s13, 5 }
   0x6   : > { %142 = sbr.rel (%p139_p2) target bundleno = 216 (0xd8), region = 32  ;;  %p163_p3 = scmp.lt.s32.totalorder (!%p139_p2), %s603_s16, 63 }
   0xb   : > { %v714_v0 = vld [vmem:[%s926_s1 + $0x8] sm:$0xff]  ;;  %v713_v1 = vld [vmem:[%s926_s1] sm:$0xff]  ;;  %s930_s16 = smov (!%p163_p3, %s603_s16), 63  ;;  %vm307_vm0 = vcmask 261120   ;;  %vm509_vm1 = vcmask 60416  }
   0xc   : > { %362 = vmatpush.bf16.msra.mxu0 %v714_v0  ;;  %715 = vmatpush.bf16.msra.mxu1 %v714_v0  ;;  %s604_s19 = sshll.u32 %s930_s16, 2  ;;  %v817_v18 = vld [vmem:[%s927_s2] ss:$0 sm:$0xff] }
   0xd   : > { %716 = vmatpush.bf16.msra.mxu2 %v714_v0  ;;  %717 = vmatpush.bf16.msra.mxu3 %v714_v0  ;;  %s780_s22 = scalar_lea.vmem %s925_s0, %s604_s19  ;;  %s826_s27 = scalar_lea.vmem %s928_s3, %s604_s19 }
   0xe   : > { %v697_v2 = vld [vmem:[%s780_s22] sm:$0xff]  ;;  %v698_v6 = vld [vmem:[%s780_s22 + $0x8] sm:$0xff]  ;;  %v699_v10 = vld [vmem:[%s780_s22 + $0x10] sm:$0xff] }
   0xf   : > { %v701_v3 = vld [vmem:[%s780_s22 + $0x20] sm:$0xff]  ;;  %v702_v7 = vld [vmem:[%s780_s22 + $0x28] sm:$0xff]  ;;  %v703_v11 = vld [vmem:[%s780_s22 + $0x30] sm:$0xff] }
  0x10   : > { %363 = vmatpush.bf16.msra.mxu0 %v713_v1  ;;  %718 = vmatpush.bf16.msra.mxu1 %v713_v1  ;;  %v705_v4 = vld [vmem:[%s780_s22 + $0x40] sm:$0xff]  ;;  %v706_v8 = vld [vmem:[%s780_s22 + $0x48] sm:$0xff]  ;;  %v707_v12 = vld [vmem:[%s780_s22 + $0x50] sm:$0xff] }
  0x11   : > { %719 = vmatpush.bf16.msra.mxu2 %v713_v1  ;;  %720 = vmatpush.bf16.msra.mxu3 %v713_v1  ;;  %v709_v5 = vld [vmem:[%s780_s22 + $0x60] sm:$0xff]  ;;  %v710_v9 = vld [vmem:[%s780_s22 + $0x68] sm:$0xff]  ;;  %v711_v13 = vld [vmem:[%s780_s22 + $0x70] sm:$0xff] }
  0x12   : > { %v700_v14 = vld [vmem:[%s780_s22 + $0x18] sm:$0xff] }
  0x13   : > { %679 = vmatmul.msk.bf16.vlgmr.msra.gmra.mxu0 %vm307_vm0, %v697_v2  ;;  %683 = vmatmul.msk.bf16.vlgmr.msra.gmra.mxu1 %vm307_vm0, %v701_v3  ;;  %v704_v15 = vld [vmem:[%s780_s22 + $0x38] sm:$0xff] }
  0x14   : > { %687 = vmatmul.msk.bf16.vlgmr.msra.gmra.mxu2 %vm307_vm0, %v705_v4  ;;  %691 = vmatmul.msk.bf16.vlgmr.msra.gmra.mxu3 %vm307_vm0, %v709_v5  ;;  %v708_v16 = vld [vmem:[%s780_s22 + $0x58] sm:$0xff] }
  0x15   : > { %v712_v17 = vld [vmem:[%s780_s22 + $0x78] sm:$0xff] }
  0x23   : > { %680 = vmatmul.msk.bf16.gmra.mxu0 %vm307_vm0, %v698_v6  ;;  %684 = vmatmul.msk.bf16.gmra.mxu1 %vm307_vm0, %v702_v7 }
  0x24   : > { %688 = vmatmul.msk.bf16.gmra.mxu2 %vm307_vm0, %v706_v8  ;;  %692 = vmatmul.msk.bf16.gmra.mxu3 %vm307_vm0, %v710_v9 }
  0x33   : > { %681 = vmatmul.msk.bf16.gmra.mxu0 %vm307_vm0, %v699_v10  ;;  %685 = vmatmul.msk.bf16.gmra.mxu1 %vm307_vm0, %v703_v11 }
  0x34   : > { %689 = vmatmul.msk.bf16.gmra.mxu2 %vm307_vm0, %v707_v12  ;;  %693 = vmatmul.msk.bf16.gmra.mxu3 %vm307_vm0, %v711_v13 }
  0x43   : > { %682 = vmatmul.msk.bf16.gmra.mxu0 %vm307_vm0, %v700_v14  ;;  %686 = vmatmul.msk.bf16.gmra.mxu1 %vm307_vm0, %v704_v15 }
  0x44   : > { %690 = vmatmul.msk.bf16.gmra.mxu2 %vm307_vm0, %v708_v16  ;;  %694 = vmatmul.msk.bf16.gmra.mxu3 %vm307_vm0, %v712_v17 }
  0x90   : > { %v365_v19 = vpop.f32.mrf.mxu0  ;;  %v385_v20 = vpop.f32.mrf.mxu1 }
  0x91   : > { %v366_v21 = vadd.f32 %v817_v18, %v365_v19  ;;  %v386_v22 = vadd.f32 %v817_v18, %v385_v20 }
  0x93   : > { %v445_v23 = vmax.f32 %v366_v21, 0.0  ;;  %v453_v24 = vmax.f32 %v386_v22, 0.0 }
  0x95   : > { %v477_v25 = vpack.c.bf16 %v445_v23, %v445_v23  ;;  %v485_v26 = vpack.c.bf16 %v453_v24, %v453_v24 }
  0x97   : > { %510 = vst.msk [vmem:[%s826_s27] sm:$0xf] %vm509_vm1, %v477_v25  ;;  %v405_v27 = vpop.f32.mrf.mxu2  ;;  %v425_v28 = vpop.f32.mrf.mxu3 }
  0x98   : > { %518 = vst.msk [vmem:[%s826_s27 + $0x20] sm:$0xf] %vm509_vm1, %v485_v26  ;;  %v406_v29 = vadd.f32 %v817_v18, %v405_v27  ;;  %v426_v30 = vadd.f32 %v817_v18, %v425_v28  ;;  %v367_v31 = vpop.f32.mrf.mxu0  ;;  %v387_v32 = vpop.f32.mrf.mxu1 }
  0x99   : > { %v368_v33 = vadd.f32 %v817_v18, %v367_v31  ;;  %v388_v34 = vadd.f32 %v817_v18, %v387_v32 }
  0x9a   : > { %v461_v35 = vmax.f32 %v406_v29, 0.0  ;;  %v469_v36 = vmax.f32 %v426_v30, 0.0 }
  0x9b   : > { %v446_v37 = vmax.f32 %v368_v33, 0.0  ;;  %v454_v38 = vmax.f32 %v388_v34, 0.0 }
  0x9c   : > { %v493_v39 = vpack.c.bf16 %v461_v35, %v461_v35  ;;  %v501_v40 = vpack.c.bf16 %v469_v36, %v469_v36 }
  0x9d   : > { %v478_v41 = vpack.c.bf16 %v446_v37, %v446_v37  ;;  %v486_v42 = vpack.c.bf16 %v454_v38, %v454_v38 }
  0x9e   : > { %526 = vst.msk [vmem:[%s826_s27 + $0x40] sm:$0xf] %vm509_vm1, %v493_v39 }
  0x9f   : > { %534 = vst.msk [vmem:[%s826_s27 + $0x60] sm:$0xf] %vm509_vm1, %v501_v40  ;;  %v407_v43 = vpop.f32.mrf.mxu2  ;;  %v427_v44 = vpop.f32.mrf.mxu3 }
  0xa0   : > { %511 = vst.msk [vmem:[%s826_s27 + $0x4] sm:$0xf] %vm509_vm1, %v478_v41  ;;  %v408_v45 = vadd.f32 %v817_v18, %v407_v43  ;;  %v428_v46 = vadd.f32 %v817_v18, %v427_v44  ;;  %v370_v47 = vpop.f32.mrf.mxu0  ;;  %v390_v48 = vpop.f32.mrf.mxu1 }
  0xa1   : > { %519 = vst.msk [vmem:[%s826_s27 + $0x24] sm:$0xf] %vm509_vm1, %v486_v42  ;;  %v371_v49 = vadd.f32 %v817_v18, %v370_v47  ;;  %v391_v50 = vadd.f32 %v817_v18, %v390_v48 }
  0xa2   : > { %v462_v51 = vmax.f32 %v408_v45, 0.0  ;;  %v470_v52 = vmax.f32 %v428_v46, 0.0 }
  0xa3   : > { %v447_v53 = vmax.f32 %v371_v49, 0.0  ;;  %v455_v54 = vmax.f32 %v391_v50, 0.0 }
  0xa4   : > { %v494_v55 = vpack.c.bf16 %v462_v51, %v462_v51  ;;  %v502_v56 = vpack.c.bf16 %v470_v52, %v470_v52 }
  0xa5   : > { %v479_v57 = vpack.c.bf16 %v447_v53, %v447_v53  ;;  %v487_v58 = vpack.c.bf16 %v455_v54, %v455_v54 }
  0xa6   : > { %527 = vst.msk [vmem:[%s826_s27 + $0x44] sm:$0xf] %vm509_vm1, %v494_v55 }
  0xa7   : > { %535 = vst.msk [vmem:[%s826_s27 + $0x64] sm:$0xf] %vm509_vm1, %v502_v56  ;;  %v410_v59 = vpop.f32.mrf.mxu2  ;;  %v430_v60 = vpop.f32.mrf.mxu3 }
  0xa8   : > { %512 = vst.msk [vmem:[%s826_s27 + $0x8] sm:$0xf] %vm509_vm1, %v479_v57  ;;  %v411_v61 = vadd.f32 %v817_v18, %v410_v59  ;;  %v431_v62 = vadd.f32 %v817_v18, %v430_v60  ;;  %v372_v63 = vpop.f32.mrf.mxu0  ;;  %v392_v0 = vpop.f32.mrf.mxu1 }
  0xa9   : > { %520 = vst.msk [vmem:[%s826_s27 + $0x28] sm:$0xf] %vm509_vm1, %v487_v58  ;;  %v373_v1 = vadd.f32 %v817_v18, %v372_v63  ;;  %v393_v2 = vadd.f32 %v817_v18, %v392_v0 }
  0xaa   : > { %v463_v3 = vmax.f32 %v411_v61, 0.0  ;;  %v471_v4 = vmax.f32 %v431_v62, 0.0 }
  0xab   : > { %v448_v5 = vmax.f32 %v373_v1, 0.0  ;;  %v456_v6 = vmax.f32 %v393_v2, 0.0 }
  0xac   : > { %v495_v7 = vpack.c.bf16 %v463_v3, %v463_v3  ;;  %v503_v8 = vpack.c.bf16 %v471_v4, %v471_v4 }
  0xad   : > { %v480_v9 = vpack.c.bf16 %v448_v5, %v448_v5  ;;  %v488_v10 = vpack.c.bf16 %v456_v6, %v456_v6 }
  0xae   : > { %528 = vst.msk [vmem:[%s826_s27 + $0x48] sm:$0xf] %vm509_vm1, %v495_v7 }
  0xaf   : > { %536 = vst.msk [vmem:[%s826_s27 + $0x68] sm:$0xf] %vm509_vm1, %v503_v8  ;;  %v412_v11 = vpop.f32.mrf.mxu2  ;;  %v432_v12 = vpop.f32.mrf.mxu3 }
  0xb0   : > { %513 = vst.msk [vmem:[%s826_s27 + $0xc] sm:$0xf] %vm509_vm1, %v480_v9  ;;  %v413_v13 = vadd.f32 %v817_v18, %v412_v11  ;;  %v433_v14 = vadd.f32 %v817_v18, %v432_v12  ;;  %v375_v15 = vpop.f32.mrf.mxu0  ;;  %v395_v16 = vpop.f32.mrf.mxu1 }
  0xb1   : > { %521 = vst.msk [vmem:[%s826_s27 + $0x2c] sm:$0xf] %vm509_vm1, %v488_v10  ;;  %v376_v17 = vadd.f32 %v817_v18, %v375_v15  ;;  %v396_v19 = vadd.f32 %v817_v18, %v395_v16 }
  0xb2   : > { %v464_v20 = vmax.f32 %v413_v13, 0.0  ;;  %v472_v21 = vmax.f32 %v433_v14, 0.0 }
  0xb3   : > { %v449_v22 = vmax.f32 %v376_v17, 0.0  ;;  %v457_v23 = vmax.f32 %v396_v19, 0.0 }
  0xb4   : > { %v496_v24 = vpack.c.bf16 %v464_v20, %v464_v20  ;;  %v504_v25 = vpack.c.bf16 %v472_v21, %v472_v21 }
  0xb5   : > { %v481_v26 = vpack.c.bf16 %v449_v22, %v449_v22  ;;  %v489_v27 = vpack.c.bf16 %v457_v23, %v457_v23 }
  0xb6   : > { %529 = vst.msk [vmem:[%s826_s27 + $0x4c] sm:$0xf] %vm509_vm1, %v496_v24 }
  0xb7   : > { %537 = vst.msk [vmem:[%s826_s27 + $0x6c] sm:$0xf] %vm509_vm1, %v504_v25  ;;  %v415_v28 = vpop.f32.mrf.mxu2  ;;  %v435_v29 = vpop.f32.mrf.mxu3 }
  0xb8   : > { %514 = vst.msk [vmem:[%s826_s27 + $0x10] sm:$0xf] %vm509_vm1, %v481_v26  ;;  %v416_v30 = vadd.f32 %v817_v18, %v415_v28  ;;  %v436_v31 = vadd.f32 %v817_v18, %v435_v29  ;;  %v377_v32 = vpop.f32.mrf.mxu0  ;;  %v397_v33 = vpop.f32.mrf.mxu1 }
  0xb9   : > { %522 = vst.msk [vmem:[%s826_s27 + $0x30] sm:$0xf] %vm509_vm1, %v489_v27  ;;  %v378_v34 = vadd.f32 %v817_v18, %v377_v32  ;;  %v398_v35 = vadd.f32 %v817_v18, %v397_v33 }
  0xba   : > { %v465_v36 = vmax.f32 %v416_v30, 0.0  ;;  %v473_v37 = vmax.f32 %v436_v31, 0.0 }
  0xbb   : > { %v450_v38 = vmax.f32 %v378_v34, 0.0  ;;  %v458_v39 = vmax.f32 %v398_v35, 0.0 }
  0xbc   : > { %v497_v40 = vpack.c.bf16 %v465_v36, %v465_v36  ;;  %v505_v41 = vpack.c.bf16 %v473_v37, %v473_v37 }
  0xbd   : > { %v482_v42 = vpack.c.bf16 %v450_v38, %v450_v38  ;;  %v490_v43 = vpack.c.bf16 %v458_v39, %v458_v39 }
  0xbe   : > { %530 = vst.msk [vmem:[%s826_s27 + $0x50] sm:$0xf] %vm509_vm1, %v497_v40 }
  0xbf   : > { %538 = vst.msk [vmem:[%s826_s27 + $0x70] sm:$0xf] %vm509_vm1, %v505_v41  ;;  %v417_v44 = vpop.f32.mrf.mxu2  ;;  %v437_v45 = vpop.f32.mrf.mxu3 }
  0xc0   : > { %515 = vst.msk [vmem:[%s826_s27 + $0x14] sm:$0xf] %vm509_vm1, %v482_v42  ;;  %v418_v46 = vadd.f32 %v817_v18, %v417_v44  ;;  %v438_v47 = vadd.f32 %v817_v18, %v437_v45  ;;  %v380_v48 = vpop.f32.mrf.mxu0  ;;  %v400_v49 = vpop.f32.mrf.mxu1 }
  0xc1   : > { %523 = vst.msk [vmem:[%s826_s27 + $0x34] sm:$0xf] %vm509_vm1, %v490_v43  ;;  %v381_v50 = vadd.f32 %v817_v18, %v380_v48  ;;  %v401_v51 = vadd.f32 %v817_v18, %v400_v49 }
  0xc2   : > { %v466_v52 = vmax.f32 %v418_v46, 0.0  ;;  %v474_v53 = vmax.f32 %v438_v47, 0.0 }
  0xc3   : > { %v451_v54 = vmax.f32 %v381_v50, 0.0  ;;  %v459_v55 = vmax.f32 %v401_v51, 0.0 }
  0xc4   : > { %v498_v56 = vpack.c.bf16 %v466_v52, %v466_v52  ;;  %v506_v57 = vpack.c.bf16 %v474_v53, %v474_v53 }
  0xc5   : > { %v483_v58 = vpack.c.bf16 %v451_v54, %v451_v54  ;;  %v491_v59 = vpack.c.bf16 %v459_v55, %v459_v55 }
  0xc6   : > { %531 = vst.msk [vmem:[%s826_s27 + $0x54] sm:$0xf] %vm509_vm1, %v498_v56 }
  0xc7   : > { %539 = vst.msk [vmem:[%s826_s27 + $0x74] sm:$0xf] %vm509_vm1, %v506_v57  ;;  %v420_v60 = vpop.f32.mrf.mxu2  ;;  %v440_v61 = vpop.f32.mrf.mxu3 }
  0xc8   : > { %516 = vst.msk [vmem:[%s826_s27 + $0x18] sm:$0xf] %vm509_vm1, %v483_v58  ;;  %v421_v62 = vadd.f32 %v817_v18, %v420_v60  ;;  %v441_v63 = vadd.f32 %v817_v18, %v440_v61  ;;  %v382_v0 = vpop.f32.mrf.mxu0  ;;  %v402_v1 = vpop.f32.mrf.mxu1 }
  0xc9   : > { %524 = vst.msk [vmem:[%s826_s27 + $0x38] sm:$0xf] %vm509_vm1, %v491_v59  ;;  %v383_v2 = vadd.f32 %v817_v18, %v382_v0  ;;  %v403_v3 = vadd.f32 %v817_v18, %v402_v1 }
  0xca   : > { %v467_v4 = vmax.f32 %v421_v62, 0.0  ;;  %v475_v5 = vmax.f32 %v441_v63, 0.0 }
  0xcb   : > { %v452_v6 = vmax.f32 %v383_v2, 0.0  ;;  %v460_v7 = vmax.f32 %v403_v3, 0.0 }
  0xcc   : > { %v499_v8 = vpack.c.bf16 %v467_v4, %v467_v4  ;;  %v507_v9 = vpack.c.bf16 %v475_v5, %v475_v5 }
  0xcd   : > { %v484_v10 = vpack.c.bf16 %v452_v6, %v452_v6  ;;  %v492_v11 = vpack.c.bf16 %v460_v7, %v460_v7 }
  0xce   : > { %532 = vst.msk [vmem:[%s826_s27 + $0x58] sm:$0xf] %vm509_vm1, %v499_v8 }
  0xcf   : > { %540 = vst.msk [vmem:[%s826_s27 + $0x78] sm:$0xf] %vm509_vm1, %v507_v9  ;;  %v422_v12 = vpop.f32.mrf.mxu2  ;;  %v442_v13 = vpop.f32.mrf.mxu3 }
  0xd0   : > { %517 = vst.msk [vmem:[%s826_s27 + $0x1c] sm:$0xf] %vm509_vm1, %v484_v10  ;;  %v423_v14 = vadd.f32 %v817_v18, %v422_v12  ;;  %v443_v15 = vadd.f32 %v817_v18, %v442_v13 }
  0xd1   : > { %525 = vst.msk [vmem:[%s826_s27 + $0x3c] sm:$0xf] %vm509_vm1, %v492_v11 }
  0xd2   : > { %v468_v16 = vmax.f32 %v423_v14, 0.0  ;;  %v476_v17 = vmax.f32 %v443_v15, 0.0 }
  0xd4   : > { %v500_v19 = vpack.c.bf16 %v468_v16, %v468_v16  ;;  %v508_v20 = vpack.c.bf16 %v476_v17, %v476_v17 }
  0xd6   : > { %533 = vst.msk [vmem:[%s826_s27 + $0x5c] sm:$0xf] %vm509_vm1, %v500_v19 }
  0xd7   : > { %541 = vst.msk [vmem:[%s826_s27 + $0x7c] sm:$0xf] %vm509_vm1, %v508_v20 }
  0xd8 PF: > { %s13_s12 = sadd.s32 1, %s736_s12  }
  0xd9   : > { %p10_p4 = scmp.ge.s32.totalorder %s13_s12, 4  }
  0xdb   :  { %12 = sbr.rel (!%p10_p4) target bundleno = 1 (0x1), region = 62 }

// kernel: bottleneck_forward.5
= control target key start
LH: loop header
LB: loop body
LE: loop exit
PB: predicated region body
PF: predicated region fallthrough
CT: control target
= control target key end

     0   :  { %s977_s15 = smov 0   ;;  %s1142_s0 = inlined_call_operand.vmem [shape: bf16[512,8], index: 0, kind: input, shape index: {}]   ;;  %s1143_s1 = inlined_call_operand.vmem [shape: bf16[8,32], index: 1, kind: input, shape index: {}]   ;;  %s1144_s2 = inlined_call_operand.vmem [shape: f32[1,32], index: 2, kind: input, shape index: {}]   ;;  %s1145_s3 = inlined_call_operand.vmem [shape: bf16[512,32], index: 3, kind: input, shape index: {}]   ;;  %s1146_s4 = inlined_call_operand.vmem [shape: bf16[512,32], index: 4, kind: output, shape index: {}]  }
   0x1 LB: > { %s744_s16 = sadd.s32 4294967295, %s950_s15   ;;  %p748_p0 = scmp.ge.s32.totalorder %s950_s15, 1  ;;  %s950_s15 = sphi %s977_s15, %s14_s15  }
   0x2   : > { %p174_p1 = scmp.lt.s32.totalorder %s950_s15, 3 }
   0x4   : > { %p175_p2 = pnand %p748_p0, %p174_p1 }
   0x5   : > { %s749_s19 = sshll.u32 (!%p175_p2), %s744_s16, 5 }
   0x6   : > { %178 = sbr.rel (%p175_p2) target bundleno = 215 (0xd7), region = 36  ;;  %p206_p3 = scmp.lt.s32.totalorder (!%p175_p2), %s749_s19, 63 }
   0xb   : > { %v256_v0 = vld [vmem:[%s1143_s1] sm:$0xf]  ;;  %vm390_vm0 = vcmask 1043456   ;;  %s1148_s19 = smov (!%p206_p3, %s749_s19), 63  ;;  %vm341_vm1 = vcmask 64512   ;;  %vm643_vm2 = vcmask 257024  }
   0xc   : > { %v392_v1 = vsel %vm390_vm0, %v256_v0, 0  ;;  %s988_s20 = sshll.u32 %s1148_s19, 2  ;;  %v1021_v20 = vld [vmem:[%s1144_s2] ss:$0 sm:$0xff] }
   0xd   : > { %401 = vmatpush.bf16.msra.mxu0 %v392_v1  ;;  %932 = vmatpush.bf16.msra.mxu1 %v392_v1  ;;  %s209_s23 = scalar_lea.vmem %s1142_s0, %s988_s20  ;;  %s1014_s26 = scalar_lea.vmem %s1145_s3, %s988_s20 }
   0xe   : > { %933 = vmatpush.bf16.msra.mxu2 %v392_v1  ;;  %934 = vmatpush.bf16.msra.mxu3 %v392_v1  ;;  %v837_v2 = vld [vmem:[%s209_s23] sm:$0xff]  ;;  %v838_v6 = vld [vmem:[%s209_s23 + $0x8] sm:$0xff]  ;;  %v839_v10 = vld [vmem:[%s209_s23 + $0x10] sm:$0xff]  ;;  %s1031_s5 = scalar_lea.vmem %s1146_s4, %s988_s20 }
   0xf   : > { %v841_v3 = vld [vmem:[%s209_s23 + $0x20] sm:$0xff]  ;;  %v842_v7 = vld [vmem:[%s209_s23 + $0x28] sm:$0xff]  ;;  %v843_v11 = vld [vmem:[%s209_s23 + $0x30] sm:$0xff] }
  0x10   : > { %v845_v4 = vld [vmem:[%s209_s23 + $0x40] sm:$0xff]  ;;  %819 = vmatmul.msk.bf16.vlgmr.msra.gmra.mxu0 %vm341_vm1, %v837_v2  ;;  %823 = vmatmul.msk.bf16.vlgmr.msra.gmra.mxu1 %vm341_vm1, %v841_v3  ;;  %v846_v8 = vld [vmem:[%s209_s23 + $0x48] sm:$0xff]  ;;  %v847_v12 = vld [vmem:[%s209_s23 + $0x50] sm:$0xff] }
  0x11   : > { %v849_v5 = vld [vmem:[%s209_s23 + $0x60] sm:$0xff]  ;;  %827 = vmatmul.msk.bf16.vlgmr.msra.gmra.mxu2 %vm341_vm1, %v845_v4  ;;  %v850_v9 = vld [vmem:[%s209_s23 + $0x68] sm:$0xff]  ;;  %v851_v13 = vld [vmem:[%s209_s23 + $0x70] sm:$0xff] }
  0x12   : > { %831 = vmatmul.msk.bf16.vlgmr.msra.gmra.mxu3 %vm341_vm1, %v849_v5  ;;  %v840_v14 = vld [vmem:[%s209_s23 + $0x18] sm:$0xff]  ;;  %v854_v18 = vld [vmem:[%s1014_s26] sm:$0xff]   ;;  %v917_v53 = vld [vmem:[%s1014_s26 + $0x8] sm:$0xff]  }
  0x13   : > { %v844_v15 = vld [vmem:[%s209_s23 + $0x38] sm:$0xff]  ;;  %v920_v19 = vld [vmem:[%s1014_s26 + $0x20] sm:$0xff]   ;;  %v855_v21 = vunpack.c.l.bf16 %v854_v18  ;;  %v856_v39 = vunpack.c.h.bf16 %v854_v18  ;;  %v921_v54 = vld [vmem:[%s1014_s26 + $0x28] sm:$0xff]   ;;  %v859_v1 = vunpack.c.l.bf16 %v917_v53 }
  0x14   : > { %v848_v16 = vld [vmem:[%s209_s23 + $0x58] sm:$0xff]  ;;  %v871_v22 = vunpack.c.l.bf16 %v920_v19  ;;  %v924_v29 = vld [vmem:[%s1014_s26 + $0x40] sm:$0xff]   ;;  %v872_v40 = vunpack.c.h.bf16 %v920_v19  ;;  %v875_v2 = vunpack.c.l.bf16 %v921_v54 }
  0x15   : > { %v852_v17 = vld [vmem:[%s209_s23 + $0x78] sm:$0xff]  ;;  %v928_v30 = vld [vmem:[%s1014_s26 + $0x60] sm:$0xff]   ;;  %v887_v33 = vunpack.c.l.bf16 %v924_v29  ;;  %v888_v59 = vunpack.c.h.bf16 %v924_v29  ;;  %v876_v29 = vunpack.c.h.bf16 %v921_v54 }
  0x16   : > { %v903_v34 = vunpack.c.l.bf16 %v928_v30  ;;  %v904_v60 = vunpack.c.h.bf16 %v928_v30 }
  0x20   : > { %820 = vmatmul.msk.bf16.gmra.mxu0 %vm341_vm1, %v838_v6  ;;  %824 = vmatmul.msk.bf16.gmra.mxu1 %vm341_vm1, %v842_v7 }
  0x21   : > { %828 = vmatmul.msk.bf16.gmra.mxu2 %vm341_vm1, %v846_v8 }
  0x22   : > { %832 = vmatmul.msk.bf16.gmra.mxu3 %vm341_vm1, %v850_v9 }
  0x30   : > { %821 = vmatmul.msk.bf16.gmra.mxu0 %vm341_vm1, %v839_v10  ;;  %825 = vmatmul.msk.bf16.gmra.mxu1 %vm341_vm1, %v843_v11 }
  0x31   : > { %829 = vmatmul.msk.bf16.gmra.mxu2 %vm341_vm1, %v847_v12 }
  0x32   : > { %833 = vmatmul.msk.bf16.gmra.mxu3 %vm341_vm1, %v851_v13  ;;  %v925_v13 = vld [vmem:[%s1014_s26 + $0x48] sm:$0xff]  }
  0x40   : > { %822 = vmatmul.msk.bf16.gmra.mxu0 %vm341_vm1, %v840_v14  ;;  %826 = vmatmul.msk.bf16.gmra.mxu1 %vm341_vm1, %v844_v15  ;;  %v929_v14 = vld [vmem:[%s1014_s26 + $0x68] sm:$0xff]  }
  0x41   : > { %830 = vmatmul.msk.bf16.gmra.mxu2 %vm341_vm1, %v848_v16 }
  0x42   : > { %834 = vmatmul.msk.bf16.gmra.mxu3 %vm341_vm1, %v852_v17 }
  0x8d   : > { %v403_v23 = vpop.f32.mrf.mxu0  ;;  %v423_v24 = vpop.f32.mrf.mxu1 }
  0x8e   : > { %v404_v25 = vadd.f32 %v1021_v20, %v403_v23  ;;  %v424_v26 = vadd.f32 %v1021_v20, %v423_v24  ;;  %v907_v23 = vunpack.c.l.bf16 %v929_v14 }
  0x90   : > { %v547_v27 = vadd.f32 %v855_v21, %v404_v25  ;;  %v555_v28 = vadd.f32 %v871_v22, %v424_v26  ;;  %v891_v22 = vunpack.c.l.bf16 %v925_v13 }
  0x92   : > { %v579_v31 = vmax.f32 %v547_v27, 0.0  ;;  %v587_v32 = vmax.f32 %v555_v28, 0.0  ;;  %v860_v28 = vunpack.c.h.bf16 %v917_v53 }
  0x94   : > { %v611_v35 = vpack.c.bf16 %v579_v31, %v579_v31  ;;  %v619_v36 = vpack.c.bf16 %v587_v32, %v587_v32  ;;  %v443_v37 = vpop.f32.mrf.mxu2 }
  0x95   : > { %v463_v38 = vpop.f32.mrf.mxu3  ;;  %v444_v41 = vadd.f32 %v1021_v20, %v443_v37  ;;  %v405_v43 = vpop.f32.mrf.mxu0 }
  0x96   : > { %v464_v42 = vadd.f32 %v1021_v20, %v463_v38  ;;  %v425_v44 = vpop.f32.mrf.mxu1  ;;  %644 = vst.msk [vmem:[%s1031_s5] sm:$0xf] %vm643_vm2, %v611_v35  ;;  %v406_v45 = vadd.f32 %v1021_v20, %v405_v43  ;;  %v922_v43 = vld [vmem:[%s1014_s26 + $0x30] sm:$0xff]  }
  0x97   : > { %v426_v46 = vadd.f32 %v1021_v20, %v425_v44  ;;  %652 = vst.msk [vmem:[%s1031_s5 + $0x20] sm:$0xf] %vm643_vm2, %v619_v36  ;;  %v563_v47 = vadd.f32 %v887_v33, %v444_v41 }
  0x98   : > { %v571_v48 = vadd.f32 %v903_v34, %v464_v42  ;;  %v548_v49 = vadd.f32 %v856_v39, %v406_v45  ;;  %v918_v42 = vld [vmem:[%s1014_s26 + $0x10] sm:$0xff]  }
  0x99   : > { %v556_v50 = vadd.f32 %v872_v40, %v426_v46  ;;  %v595_v51 = vmax.f32 %v563_v47, 0.0  ;;  %v863_v54 = vunpack.c.l.bf16 %v918_v42 }
  0x9a   : > { %v603_v52 = vmax.f32 %v571_v48, 0.0  ;;  %v580_v55 = vmax.f32 %v548_v49, 0.0  ;;  %v892_v48 = vunpack.c.h.bf16 %v925_v13  ;;  %v908_v49 = vunpack.c.h.bf16 %v929_v14 }
  0x9b   : > { %v588_v56 = vmax.f32 %v556_v50, 0.0  ;;  %v627_v57 = vpack.c.bf16 %v595_v51, %v595_v51 }
  0x9c   : > { %v635_v58 = vpack.c.bf16 %v603_v52, %v603_v52  ;;  %v612_v61 = vpack.c.bf16 %v580_v55, %v580_v55  ;;  %v445_v63 = vpop.f32.mrf.mxu2  ;;  %v879_v55 = vunpack.c.l.bf16 %v922_v43 }
  0x9d   : > { %v620_v62 = vpack.c.bf16 %v588_v56, %v588_v56  ;;  %v465_v0 = vpop.f32.mrf.mxu3  ;;  %660 = vst.msk [vmem:[%s1031_s5 + $0x40] sm:$0xf] %vm643_vm2, %v627_v57  ;;  %v446_v3 = vadd.f32 %v1021_v20, %v445_v63  ;;  %v408_v5 = vpop.f32.mrf.mxu0 }
  0x9e   : > { %v466_v4 = vadd.f32 %v1021_v20, %v465_v0  ;;  %v428_v6 = vpop.f32.mrf.mxu1  ;;  %668 = vst.msk [vmem:[%s1031_s5 + $0x60] sm:$0xf] %vm643_vm2, %v635_v58  ;;  %v409_v7 = vadd.f32 %v1021_v20, %v408_v5 }
  0x9f   : > { %v429_v8 = vadd.f32 %v1021_v20, %v428_v6  ;;  %645 = vst.msk [vmem:[%s1031_s5 + $0x4] sm:$0xf] %vm643_vm2, %v612_v61  ;;  %v564_v9 = vadd.f32 %v888_v59, %v446_v3  ;;  %v930_v3 = vld [vmem:[%s1014_s26 + $0x70] sm:$0xff]  }
  0xa0   : > { %v572_v10 = vadd.f32 %v904_v60, %v466_v4  ;;  %653 = vst.msk [vmem:[%s1031_s5 + $0x24] sm:$0xf] %vm643_vm2, %v620_v62  ;;  %v549_v11 = vadd.f32 %v859_v1, %v409_v7 }
  0xa1   : > { %v557_v12 = vadd.f32 %v875_v2, %v429_v8  ;;  %v596_v15 = vmax.f32 %v564_v9, 0.0  ;;  %v926_v2 = vld [vmem:[%s1014_s26 + $0x50] sm:$0xff]  }
  0xa2   : > { %v604_v16 = vmax.f32 %v572_v10, 0.0  ;;  %v581_v17 = vmax.f32 %v549_v11, 0.0  ;;  %v895_v10 = vunpack.c.l.bf16 %v926_v2  ;;  %v911_v11 = vunpack.c.l.bf16 %v930_v3 }
  0xa3   : > { %v589_v18 = vmax.f32 %v557_v12, 0.0  ;;  %v628_v19 = vpack.c.bf16 %v596_v15, %v596_v15 }
  0xa4   : > { %v636_v21 = vpack.c.bf16 %v604_v16, %v604_v16  ;;  %v613_v24 = vpack.c.bf16 %v581_v17, %v581_v17  ;;  %v448_v26 = vpop.f32.mrf.mxu2  ;;  %v864_v16 = vunpack.c.h.bf16 %v918_v42  ;;  %v880_v17 = vunpack.c.h.bf16 %v922_v43 }
  0xa5   : > { %v621_v25 = vpack.c.bf16 %v589_v18, %v589_v18  ;;  %v468_v27 = vpop.f32.mrf.mxu3  ;;  %661 = vst.msk [vmem:[%s1031_s5 + $0x44] sm:$0xf] %vm643_vm2, %v628_v19  ;;  %v449_v30 = vadd.f32 %v1021_v20, %v448_v26  ;;  %v410_v32 = vpop.f32.mrf.mxu0 }
  0xa6   : > { %v469_v31 = vadd.f32 %v1021_v20, %v468_v27  ;;  %v430_v33 = vpop.f32.mrf.mxu1  ;;  %669 = vst.msk [vmem:[%s1031_s5 + $0x64] sm:$0xf] %vm643_vm2, %v636_v21  ;;  %v411_v34 = vadd.f32 %v1021_v20, %v410_v32  ;;  %v923_v32 = vld [vmem:[%s1014_s26 + $0x38] sm:$0xff]  }
  0xa7   : > { %v431_v35 = vadd.f32 %v1021_v20, %v430_v33  ;;  %646 = vst.msk [vmem:[%s1031_s5 + $0x8] sm:$0xf] %vm643_vm2, %v613_v24  ;;  %v565_v36 = vadd.f32 %v891_v22, %v449_v30 }
  0xa8   : > { %v573_v37 = vadd.f32 %v907_v23, %v469_v31  ;;  %654 = vst.msk [vmem:[%s1031_s5 + $0x28] sm:$0xf] %vm643_vm2, %v621_v25  ;;  %v550_v38 = vadd.f32 %v860_v28, %v411_v34  ;;  %v919_v31 = vld [vmem:[%s1014_s26 + $0x18] sm:$0xff]  }
  0xa9   : > { %v558_v39 = vadd.f32 %v876_v29, %v431_v35  ;;  %v597_v40 = vmax.f32 %v565_v36, 0.0  ;;  %v867_v43 = vunpack.c.l.bf16 %v919_v31 }
  0xaa   : > { %v605_v41 = vmax.f32 %v573_v37, 0.0  ;;  %v582_v44 = vmax.f32 %v550_v38, 0.0  ;;  %v896_v37 = vunpack.c.h.bf16 %v926_v2  ;;  %v912_v38 = vunpack.c.h.bf16 %v930_v3 }
  0xab   : > { %v590_v45 = vmax.f32 %v558_v39, 0.0  ;;  %v629_v46 = vpack.c.bf16 %v597_v40, %v597_v40 }
  0xac   : > { %v637_v47 = vpack.c.bf16 %v605_v41, %v605_v41  ;;  %v614_v50 = vpack.c.bf16 %v582_v44, %v582_v44  ;;  %v450_v52 = vpop.f32.mrf.mxu2  ;;  %v883_v44 = vunpack.c.l.bf16 %v923_v32 }
  0xad   : > { %v622_v51 = vpack.c.bf16 %v590_v45, %v590_v45  ;;  %v470_v53 = vpop.f32.mrf.mxu3  ;;  %662 = vst.msk [vmem:[%s1031_s5 + $0x48] sm:$0xf] %vm643_vm2, %v629_v46  ;;  %v451_v56 = vadd.f32 %v1021_v20, %v450_v52  ;;  %v413_v58 = vpop.f32.mrf.mxu0 }
  0xae   : > { %v471_v57 = vadd.f32 %v1021_v20, %v470_v53  ;;  %v433_v59 = vpop.f32.mrf.mxu1  ;;  %670 = vst.msk [vmem:[%s1031_s5 + $0x68] sm:$0xf] %vm643_vm2, %v637_v47  ;;  %v414_v60 = vadd.f32 %v1021_v20, %v413_v58 }
  0xaf   : > { %v434_v61 = vadd.f32 %v1021_v20, %v433_v59  ;;  %647 = vst.msk [vmem:[%s1031_s5 + $0xc] sm:$0xf] %vm643_vm2, %v614_v50  ;;  %v566_v62 = vadd.f32 %v892_v48, %v451_v56  ;;  %v931_v56 = vld [vmem:[%s1014_s26 + $0x78] sm:$0xff]  }
  0xb0   : > { %v574_v63 = vadd.f32 %v908_v49, %v471_v57  ;;  %655 = vst.msk [vmem:[%s1031_s5 + $0x2c] sm:$0xf] %vm643_vm2, %v622_v51  ;;  %v551_v0 = vadd.f32 %v863_v54, %v414_v60 }
  0xb1   : > { %v559_v1 = vadd.f32 %v879_v55, %v434_v61  ;;  %v598_v4 = vmax.f32 %v566_v62, 0.0  ;;  %v927_v55 = vld [vmem:[%s1014_s26 + $0x58] sm:$0xff]  }
  0xb2   : > { %v606_v5 = vmax.f32 %v574_v63, 0.0  ;;  %v583_v6 = vmax.f32 %v551_v0, 0.0  ;;  %v899_v63 = vunpack.c.l.bf16 %v927_v55  ;;  %v915_v0 = vunpack.c.l.bf16 %v931_v56 }
  0xb3   : > { %v591_v7 = vmax.f32 %v559_v1, 0.0  ;;  %v630_v8 = vpack.c.bf16 %v598_v4, %v598_v4 }
  0xb4   : > { %v638_v9 = vpack.c.bf16 %v606_v5, %v606_v5  ;;  %v615_v12 = vpack.c.bf16 %v583_v6, %v583_v6  ;;  %v453_v14 = vpop.f32.mrf.mxu2  ;;  %v868_v5 = vunpack.c.h.bf16 %v919_v31  ;;  %v884_v6 = vunpack.c.h.bf16 %v923_v32 }
  0xb5   : > { %v623_v13 = vpack.c.bf16 %v591_v7, %v591_v7  ;;  %v473_v15 = vpop.f32.mrf.mxu3  ;;  %663 = vst.msk [vmem:[%s1031_s5 + $0x4c] sm:$0xf] %vm643_vm2, %v630_v8  ;;  %v454_v18 = vadd.f32 %v1021_v20, %v453_v14  ;;  %v415_v21 = vpop.f32.mrf.mxu0 }
  0xb6   : > { %v474_v19 = vadd.f32 %v1021_v20, %v473_v15  ;;  %v435_v22 = vpop.f32.mrf.mxu1  ;;  %671 = vst.msk [vmem:[%s1031_s5 + $0x6c] sm:$0xf] %vm643_vm2, %v638_v9  ;;  %v416_v23 = vadd.f32 %v1021_v20, %v415_v21 }
  0xb7   : > { %v436_v24 = vadd.f32 %v1021_v20, %v435_v22  ;;  %648 = vst.msk [vmem:[%s1031_s5 + $0x10] sm:$0xf] %vm643_vm2, %v615_v12  ;;  %v567_v25 = vadd.f32 %v895_v10, %v454_v18 }
  0xb8   : > { %v575_v26 = vadd.f32 %v911_v11, %v474_v19  ;;  %656 = vst.msk [vmem:[%s1031_s5 + $0x30] sm:$0xf] %vm643_vm2, %v623_v13  ;;  %v552_v27 = vadd.f32 %v864_v16, %v416_v23 }
  0xb9   : > { %v560_v28 = vadd.f32 %v880_v17, %v436_v24  ;;  %v599_v29 = vmax.f32 %v567_v25, 0.0  ;;  %v900_v24 = vunpack.c.h.bf16 %v927_v55  ;;  %v916_v25 = vunpack.c.h.bf16 %v931_v56 }
  0xba   : > { %v607_v30 = vmax.f32 %v575_v26, 0.0  ;;  %v584_v33 = vmax.f32 %v552_v27, 0.0 }
  0xbb   : > { %v592_v34 = vmax.f32 %v560_v28, 0.0  ;;  %v631_v35 = vpack.c.bf16 %v599_v29, %v599_v29 }
  0xbc   : > { %v639_v36 = vpack.c.bf16 %v607_v30, %v607_v30  ;;  %v616_v39 = vpack.c.bf16 %v584_v33, %v584_v33  ;;  %v455_v41 = vpop.f32.mrf.mxu2 }
  0xbd   : > { %v624_v40 = vpack.c.bf16 %v592_v34, %v592_v34  ;;  %v475_v42 = vpop.f32.mrf.mxu3  ;;  %664 = vst.msk [vmem:[%s1031_s5 + $0x50] sm:$0xf] %vm643_vm2, %v631_v35  ;;  %v456_v45 = vadd.f32 %v1021_v20, %v455_v41  ;;  %v418_v47 = vpop.f32.mrf.mxu0 }
  0xbe   : > { %v476_v46 = vadd.f32 %v1021_v20, %v475_v42  ;;  %v438_v48 = vpop.f32.mrf.mxu1  ;;  %672 = vst.msk [vmem:[%s1031_s5 + $0x70] sm:$0xf] %vm643_vm2, %v639_v36  ;;  %v419_v49 = vadd.f32 %v1021_v20, %v418_v47 }
  0xbf   : > { %v439_v50 = vadd.f32 %v1021_v20, %v438_v48  ;;  %649 = vst.msk [vmem:[%s1031_s5 + $0x14] sm:$0xf] %vm643_vm2, %v616_v39  ;;  %v568_v51 = vadd.f32 %v896_v37, %v456_v45 }
  0xc0   : > { %v576_v52 = vadd.f32 %v912_v38, %v476_v46  ;;  %657 = vst.msk [vmem:[%s1031_s5 + $0x34] sm:$0xf] %vm643_vm2, %v624_v40  ;;  %v553_v53 = vadd.f32 %v867_v43, %v419_v49 }
  0xc1   : > { %v561_v54 = vadd.f32 %v883_v44, %v439_v50  ;;  %v600_v57 = vmax.f32 %v568_v51, 0.0 }
  0xc2   : > { %v608_v58 = vmax.f32 %v576_v52, 0.0  ;;  %v585_v59 = vmax.f32 %v553_v53, 0.0 }
  0xc3   : > { %v593_v60 = vmax.f32 %v561_v54, 0.0  ;;  %v632_v61 = vpack.c.bf16 %v600_v57, %v600_v57 }
  0xc4   : > { %v640_v62 = vpack.c.bf16 %v608_v58, %v608_v58  ;;  %v617_v1 = vpack.c.bf16 %v585_v59, %v585_v59  ;;  %v458_v3 = vpop.f32.mrf.mxu2 }
  0xc5   : > { %v625_v2 = vpack.c.bf16 %v593_v60, %v593_v60  ;;  %v478_v4 = vpop.f32.mrf.mxu3  ;;  %665 = vst.msk [vmem:[%s1031_s5 + $0x54] sm:$0xf] %vm643_vm2, %v632_v61  ;;  %v459_v7 = vadd.f32 %v1021_v20, %v458_v3  ;;  %v420_v9 = vpop.f32.mrf.mxu0 }
  0xc6   : > { %v479_v8 = vadd.f32 %v1021_v20, %v478_v4  ;;  %v440_v10 = vpop.f32.mrf.mxu1  ;;  %673 = vst.msk [vmem:[%s1031_s5 + $0x74] sm:$0xf] %vm643_vm2, %v640_v62  ;;  %v421_v11 = vadd.f32 %v1021_v20, %v420_v9 }
  0xc7   : > { %v441_v12 = vadd.f32 %v1021_v20, %v440_v10  ;;  %650 = vst.msk [vmem:[%s1031_s5 + $0x18] sm:$0xf] %vm643_vm2, %v617_v1  ;;  %v569_v13 = vadd.f32 %v899_v63, %v459_v7 }
  0xc8   : > { %v577_v14 = vadd.f32 %v915_v0, %v479_v8  ;;  %658 = vst.msk [vmem:[%s1031_s5 + $0x38] sm:$0xf] %vm643_vm2, %v625_v2  ;;  %v554_v15 = vadd.f32 %v868_v5, %v421_v11 }
  0xc9   : > { %v562_v16 = vadd.f32 %v884_v6, %v441_v12  ;;  %v601_v17 = vmax.f32 %v569_v13, 0.0 }
  0xca   : > { %v609_v18 = vmax.f32 %v577_v14, 0.0  ;;  %v586_v19 = vmax.f32 %v554_v15, 0.0 }
  0xcb   : > { %v594_v21 = vmax.f32 %v562_v16, 0.0  ;;  %v633_v22 = vpack.c.bf16 %v601_v17, %v601_v17 }
  0xcc   : > { %v641_v23 = vpack.c.bf16 %v609_v18, %v609_v18  ;;  %v618_v26 = vpack.c.bf16 %v586_v19, %v586_v19  ;;  %v460_v28 = vpop.f32.mrf.mxu2 }
  0xcd   : > { %v626_v27 = vpack.c.bf16 %v594_v21, %v594_v21  ;;  %v480_v29 = vpop.f32.mrf.mxu3  ;;  %666 = vst.msk [vmem:[%s1031_s5 + $0x58] sm:$0xf] %vm643_vm2, %v633_v22  ;;  %v461_v30 = vadd.f32 %v1021_v20, %v460_v28 }
  0xce   : > { %v481_v31 = vadd.f32 %v1021_v20, %v480_v29  ;;  %674 = vst.msk [vmem:[%s1031_s5 + $0x78] sm:$0xf] %vm643_vm2, %v641_v23 }
  0xcf   : > { %651 = vst.msk [vmem:[%s1031_s5 + $0x1c] sm:$0xf] %vm643_vm2, %v618_v26  ;;  %v570_v32 = vadd.f32 %v900_v24, %v461_v30 }
  0xd0   : > { %v578_v33 = vadd.f32 %v916_v25, %v481_v31  ;;  %659 = vst.msk [vmem:[%s1031_s5 + $0x3c] sm:$0xf] %vm643_vm2, %v626_v27 }
  0xd1   : > { %v602_v34 = vmax.f32 %v570_v32, 0.0 }
  0xd2   : > { %v610_v35 = vmax.f32 %v578_v33, 0.0 }
  0xd3   : > { %v634_v36 = vpack.c.bf16 %v602_v34, %v602_v34 }
  0xd4   : > { %v642_v37 = vpack.c.bf16 %v610_v35, %v610_v35 }
  0xd5   : > { %667 = vst.msk [vmem:[%s1031_s5 + $0x5c] sm:$0xf] %vm643_vm2, %v634_v36 }
  0xd6   : > { %675 = vst.msk [vmem:[%s1031_s5 + $0x7c] sm:$0xf] %vm643_vm2, %v642_v37 }
  0xd7 PF: > { %s14_s15 = sadd.s32 1, %s950_s15  }
  0xd8   : > { %p11_p4 = scmp.ge.s32.totalorder %s14_s15, 4  }
  0xda   :  { %13 = sbr.rel (!%p11_p4) target bundleno = 1 (0x1), region = 69 }

// kernel: bottleneck_forward.4
= control target key start
LH: loop header
LB: loop body
LE: loop exit
PB: predicated region body
PF: predicated region fallthrough
CT: control target
= control target key end

     0   :  { %s1595_s12 = smov 0   ;;  %s1597_s13 = smov 0   ;;  %s2170_s0 = inlined_call_operand.vmem [shape: bf16[2,20,20,8], index: 0, kind: input, shape index: {}]   ;;  %s2171_s1 = inlined_call_operand.vmem [shape: bf16[3,24,8], index: 1, kind: input, shape index: {}]   ;;  %s2172_s2 = inlined_call_operand.vmem [shape: f32[1,8], index: 2, kind: input, shape index: {}]   ;;  %s2173_s3 = inlined_call_operand.vmem [shape: bf16[2,16,16,8], index: 3, kind: output, shape index: {}]  }
   0x1   :  { %s1599_s14 = smov 0  }
   0x2 LB: > { %s25_s15 = sadd.s32 1, %s1567_s13  ;;  %p1339_p0 = scmp.ge.s32.totalorder %s1571_s14, 1  ;;  %s1571_s14 = sphi %s1599_s14, %s13_s14   ;;  %s1567_s13 = sphi %s1597_s13, %s2175_s13   ;;  %s1563_s12 = sphi %s1595_s12, %s2174_s12  }
   0x3   : > { %p27_p1 = scmp.ge.s32.totalorder %s25_s15, 2  ;;  %p151_p2 = scmp.lt.s32.totalorder %s1571_s14, 3 }
   0x5   : > { %s2177_s15 = smov (%p27_p1, %s25_s15), 0  ;;  %p152_p3 = pnand %p1339_p0, %p151_p2 }
   0x6   : > { %p180_p4 = scmp.lt.s32.totalorder (!%p152_p3), %s1563_s12, 1  ;;  %s1573_s20 = smov (!%p152_p3), 16  }
   0x7   : > { %155 = sbr.rel (%p152_p3) target bundleno = 485 (0x1e5), region = 32  ;;  %s1574_s21 = smov (!%p152_p3), 8  }
   0xc   : > { %s2179_s12 = smov (!%p180_p4, %s1563_s12), 1  ;;  %vm522_vm0 = vcmask 1045504   ;;  %vm421_vm1 = vcmask 1046528   ;;  %vm774_vm2 = vcmask 1043456   ;;  %vm623_vm3 = vcmask 64512  }
   0xd   : > { %s1521_s16 = smul.u32 240, %s2179_s12  ;;  %vm684_vm4 = vcmask 130048   ;;  %vm741_vm5 = vcmask 195584   ;;  %s1491_s9 = sshll.u32 %s2179_s12, 7  ;;  %vm1213_vm6 = vcmask 60416  }
   0xf   : > { %s1619_s19 = scalar_lea.vmem %s2170_s0, %s1521_s16  ;;  %s1989_s16 = scalar_lea.vmem %s2173_s3, %s1491_s9 }
  0x10   : > { %v1622_v0 = vld [vmem:[%s1619_s19 + $0x30] sm:$0xff]  ;;  %v215_v1 = vld [vmem:[%s1619_s19 + $0x38] sm:$0x3]  ;;  %v203_v5 = vld [vmem:[%s1619_s19 + $0x8] sm:$0x3] }
  0x11   : > { %v385_v2 = vunpack.c.l.b16 %v215_v1  ;;  %v245_v3 = vld [vmem:[%s1619_s19 + $0xb0] sm:$0x3]  ;;  %v535_v7 = vrot.slane %v1622_v0, 2  ;;  %v434_v8 = vrot.slane %v1622_v0, 1  ;;  %v1630_v9 = vld [vmem:[%s1619_s19 + $0xa8] sm:$0xff]  ;;  %v381_v10 = vunpack.c.l.b16 %v203_v5  ;;  %v1636_v17 = vld [vmem:[%s1619_s19] sm:$0xff] }
  0x12   : > { %v395_v4 = vunpack.c.l.b16 %v245_v3  ;;  %v209_v14 = vld [vmem:[%s1619_s19 + $0x20] sm:$0x3]  ;;  %v565_v18 = vrot.slane %v1630_v9, 2  ;;  %v464_v22 = vrot.slane %v1630_v9, 1  ;;  %v422_v24 = vrot.slane %v1636_v17, 1  ;;  %v1644_v26 = vld [vmem:[%s1619_s19 + $0x18] sm:$0xff] }
  0x13   : > { %v405_v6 = vpack.c.b16 %v385_v2, %v385_v2  ;;  %v383_v19 = vunpack.c.l.b16 %v209_v14  ;;  %v401_v20 = vpack.c.b16 %v381_v10, %v381_v10  ;;  %v218_v31 = vld [vmem:[%s1619_s19 + $0x44] sm:$0x3]  ;;  %v248_v32 = vld [vmem:[%s1619_s19 + $0xbc] sm:$0x3]  ;;  %v428_v33 = vrot.slane %v1644_v26, 1  ;;  %v1664_v46 = vld [vmem:[%s1619_s19 + $0xb4] sm:$0xff] }
  0x14   : > { %v415_v13 = vpack.c.b16 %v395_v4, %v395_v4  ;;  %v529_v35 = vrot.slane %v1644_v26, 2  ;;  %v386_v36 = vunpack.c.l.b16 %v218_v31  ;;  %v523_v38 = vrot.slane %v1636_v17, 2  ;;  %v1659_v42 = vld [vmem:[%s1619_s19 + $0x3c] sm:$0xff]  ;;  %v212_v48 = vld [vmem:[%s1619_s19 + $0x2c] sm:$0x3]  ;;  %v1676_v59 = vld [vmem:[%s1619_s19 + $0x24] sm:$0xff] }
  0x15   : > { %v536_v11 = vrot.slane %v405_v6, 2  ;;  %v435_v12 = vrot.slane %v405_v6, 1  ;;  %v423_v25 = vrot.slane %v401_v20, 1  ;;  %v403_v27 = vpack.c.b16 %v383_v19, %v383_v19  ;;  %v206_v49 = vld [vmem:[%s1619_s19 + $0x14] sm:$0x3]  ;;  %v1681_v63 = vld [vmem:[%s1619_s19 + $0xc] sm:$0xff] }
  0x16   : > { %v566_v21 = vrot.slane %v415_v13, 2  ;;  %v465_v23 = vrot.slane %v415_v13, 1  ;;  %v524_v39 = vrot.slane %v401_v20, 2  ;;  %v396_v40 = vunpack.c.l.b16 %v248_v32  ;;  %v221_v2 = vld [vmem:[%s1619_s19 + $0x50] sm:$0x3]  ;;  %v1694_v14 = vld [vmem:[%s1619_s19 + $0x48] sm:$0xff] }
  0x17   : > { %v537_v15 = vsel %vm522_vm0, %v535_v7, %v536_v11  ;;  %v436_v16 = vsel %vm421_vm1, %v434_v8, %v435_v12  ;;  %v424_v28 = vsel %vm421_vm1, %v422_v24, %v423_v25  ;;  %v429_v34 = vrot.slane %v403_v27, 1  ;;  %v224_v31 = vld [vmem:[%s1619_s19 + $0x5c] sm:$0x3]  ;;  %v254_v32 = vld [vmem:[%s1619_s19 + $0xd4] sm:$0x3] }
  0x18   : > { %591 = vrot.lane.b32.xlu1 %v537_v15, %s1573_s20  ;;  %490 = vrot.lane.b32.xlu0 %v436_v16, %s1574_s21  ;;  %v567_v29 = vsel %vm522_vm0, %v565_v18, %v566_v21  ;;  %v466_v30 = vsel %vm421_vm1, %v464_v22, %v465_v23  ;;  %v530_v37 = vrot.slane %v403_v27, 2  ;;  %v406_v43 = vpack.c.b16 %v386_v36, %v386_v36  ;;  %v251_v16 = vld [vmem:[%s1619_s19 + $0xc8] sm:$0x3]  ;;  %v1705_v27 = vld [vmem:[%s1619_s19 + $0xc0] sm:$0xff] }
  0x19   : > { %482 = vrot.lane.b32.xlu2 %v424_v28, %s1574_s21  ;;  %v430_v41 = vsel %vm421_vm1, %v428_v33, %v429_v34  ;;  %v525_v45 = vsel %vm522_vm0, %v523_v38, %v524_v39  ;;  %v416_v47 = vpack.c.b16 %v396_v40, %v396_v40  ;;  %v437_v50 = vrot.slane %v1659_v42, 1 }
  0x1a   : > { %v531_v44 = vsel %vm522_vm0, %v529_v35, %v530_v37  ;;  %v438_v51 = vrot.slane %v406_v43, 1  ;;  %v538_v52 = vrot.slane %v1659_v42, 2  ;;  %v539_v53 = vrot.slane %v406_v43, 2  ;;  %v1719_v43 = vld [vmem:[%s1619_s19 + $0x54] sm:$0xff] }
  0x1b   : > { %v467_v54 = vrot.slane %v1664_v46, 1  ;;  %v468_v55 = vrot.slane %v416_v47, 1  ;;  %v384_v56 = vunpack.c.l.b16 %v212_v48  ;;  %v382_v57 = vunpack.c.l.b16 %v206_v49  ;;  %v1724_v48 = vld [vmem:[%s1619_s19 + $0xcc] sm:$0xff] }
  0x1c   : > { %v439_v58 = vsel %vm421_vm1, %v437_v50, %v438_v51  ;;  %v540_v60 = vsel %vm522_vm0, %v538_v52, %v539_v53  ;;  %v568_v3 = vrot.slane %v1664_v46, 2  ;;  %v569_v4 = vrot.slane %v416_v47, 2  ;;  %v227_v50 = vld [vmem:[%s1619_s19 + $0x68] sm:$0x3]  ;;  %v239_v51 = vld [vmem:[%s1619_s19 + $0x98] sm:$0x3] }
  0x1d   : > { %v469_v61 = vsel %vm421_vm1, %v467_v54, %v468_v55  ;;  %v404_v62 = vpack.c.b16 %v384_v56, %v384_v56  ;;  %v402_v1 = vpack.c.b16 %v382_v57, %v382_v57  ;;  %v431_v5 = vrot.slane %v1676_v59, 1 }
  0x1e   : > { %v425_v7 = vrot.slane %v1681_v63, 1  ;;  %v387_v10 = vunpack.c.l.b16 %v221_v2  ;;  %v570_v11 = vsel %vm522_vm0, %v568_v3, %v569_v4  ;;  %v526_v18 = vrot.slane %v1681_v63, 2  ;;  %v1739_v2 = vld [vmem:[%s1619_s19 + $0x60] sm:$0xff] }
  0x1f   : > { %v432_v6 = vrot.slane %v404_v62, 1  ;;  %v426_v8 = vrot.slane %v402_v1, 1  ;;  %v527_v19 = vrot.slane %v402_v1, 2  ;;  %v397_v20 = vunpack.c.l.b16 %v251_v16  ;;  %v1759_v16 = vld [vmem:[%s2171_s1 + $0x18] sm:$0xff] }
  0x20   : > { %611 = vrot.lane.b32.xlu1 %v567_v29, %s1573_s20  ;;  %510 = vrot.lane.b32.xlu0 %v466_v30, %s1574_s21  ;;  %v407_v15 = vpack.c.b16 %v387_v10, %v387_v10  ;;  %v440_v21 = vrot.slane %v1694_v14, 1  ;;  %v532_v23 = vrot.slane %v1676_v59, 2  ;;  %v533_v24 = vrot.slane %v404_v62, 2  ;;  %v230_v10 = vld [vmem:[%s1619_s19 + $0x74] sm:$0x3] }
  0x21   : > { %486 = vrot.lane.b32.xlu2 %v430_v41, %s1574_s21  ;;  %v433_v12 = vsel %vm421_vm1, %v431_v5, %v432_v6  ;;  %v427_v13 = vsel %vm421_vm1, %v425_v7, %v426_v8  ;;  %v528_v25 = vsel %vm522_vm0, %v526_v18, %v527_v19  ;;  %v417_v28 = vpack.c.b16 %v397_v20, %v397_v20  ;;  %v1744_v7 = vld [vmem:[%s1619_s19 + $0x90] sm:$0xff] }
  0x22   : > { %v441_v22 = vrot.slane %v407_v15, 1  ;;  %v534_v30 = vsel %vm522_vm0, %v532_v23, %v533_v24  ;;  %v470_v33 = vrot.slane %v1705_v27, 1  ;;  %v571_v35 = vrot.slane %v1705_v27, 2 }
  0x23   : > { %v471_v34 = vrot.slane %v417_v28, 1  ;;  %v388_v36 = vunpack.c.l.b16 %v224_v31  ;;  %v572_v37 = vrot.slane %v417_v28, 2  ;;  %v541_v38 = vrot.slane %v1694_v14, 2 }
  0x24   : > { %v442_v29 = vsel %vm421_vm1, %v440_v21, %v441_v22  ;;  %v542_v39 = vrot.slane %v407_v15, 2  ;;  %v398_v40 = vunpack.c.l.b16 %v254_v32  ;;  %v443_v52 = vrot.slane %v1719_v43, 1 }
  0x25   : > { %v472_v41 = vsel %vm421_vm1, %v470_v33, %v471_v34  ;;  %v544_v54 = vrot.slane %v1719_v43, 2  ;;  %v473_v56 = vrot.slane %v1724_v48, 1  ;;  %v446_v15 = vrot.slane %v1739_v2, 1 }
  0x26   : > { %v543_v47 = vsel %vm522_vm0, %v541_v38, %v542_v39  ;;  %v418_v49 = vpack.c.b16 %v398_v40, %v398_v40  ;;  %v458_v19 = vrot.slane %v1744_v7, 1  ;;  %v390_v21 = vunpack.c.l.b16 %v230_v10  ;;  %v1780_v40 = vld [vmem:[%s1619_s19 + $0x9c] sm:$0xff]  ;;  %v236_v10 = vld [vmem:[%s1619_s19 + $0x8c] sm:$0x3] }
  0x27   : > { %v559_v32 = vrot.slane %v1744_v7, 2 }
  0x28   : > { %587 = vrot.lane.b32.xlu1 %v531_v44, %s1573_s20  ;;  %583 = vrot.lane.b32.xlu0 %v525_v45, %s1573_s20  ;;  %v408_v44 = vpack.c.b16 %v388_v36, %v388_v36  ;;  %v573_v45 = vsel %vm522_vm0, %v571_v35, %v572_v37  ;;  %v474_v57 = vrot.slane %v418_v49, 1  ;;  %v410_v28 = vpack.c.b16 %v390_v21, %v390_v21 }
  0x29   : > { %492 = vrot.lane.b32.xlu2 %v439_v58, %s1574_s21  ;;  %v389_v58 = vunpack.c.l.b16 %v227_v50 }
  0x2a   : > { %v444_v53 = vrot.slane %v408_v44, 1  ;;  %v545_v55 = vrot.slane %v408_v44, 2  ;;  %v475_v5 = vsel %vm421_vm1, %v473_v56, %v474_v57  ;;  %v450_v35 = vrot.slane %v410_v28, 1  ;;  %v233_v44 = vld [vmem:[%s1619_s19 + $0x80] sm:$0x3] }
  0x2b   : > { %v409_v6 = vpack.c.b16 %v389_v58, %v389_v58  ;;  %v1425_v56 = vld [vmem:[%s2171_s1 + $0x14] sm:$0xf] }
  0x2c   : > { %v445_v62 = vsel %vm421_vm1, %v443_v52, %v444_v53  ;;  %v546_v4 = vsel %vm522_vm0, %v544_v54, %v545_v55  ;;  %v1791_v54 = vld [vmem:[%s1619_s19 + $0x78] sm:$0xff] }
  0x2d   : > { %v447_v18 = vrot.slane %v409_v6, 1  ;;  %v548_v31 = vrot.slane %v409_v6, 2  ;;  %v553_v57 = vrot.slane %v1791_v54, 2  ;;  %v1513_v6 = vld [vmem:[%s2171_s1 + $0xc] sm:$0xff] }
  0x2f   : > { %v448_v23 = vsel %vm421_vm1, %v446_v15, %v447_v18  ;;  %v1813_v18 = vld [vmem:[%s1619_s19 + $0x84] sm:$0xff] }
  0x30   : > { %593 = vrot.lane.b32.xlu1 %v540_v60, %s1573_s20  ;;  %512 = vrot.lane.b32.xlu0 %v469_v61, %s1574_s21  ;;  %v393_v60 = vunpack.c.l.b16 %v239_v51  ;;  %v1468_v61 = vld [vmem:[%s2171_s1 + $0x20] sm:$0xf]  ;;  %v391_v51 = vunpack.c.l.b16 %v233_v44  ;;  %v455_v21 = vrot.slane %v1813_v18, 1 }
  0x31   : > { %613 = vrot.lane.b32.xlu2 %v570_v11, %s1573_s20  ;;  %v981_v1 = vunpack.c.l.b16 %v1468_v61  ;;  %v574_v11 = vrot.slane %v1724_v48, 2 }
  0x32   : > { %v413_v8 = vpack.c.b16 %v393_v60, %v393_v60  ;;  %v411_v55 = vpack.c.b16 %v391_v51, %v391_v51  ;;  %v737_v60 = vunpack.c.l.b16 %v1425_v56 }
  0x33   : > { %v983_v3 = vpack.c.b16 %v981_v1, %v981_v1 }
  0x34   : > { %v459_v20 = vrot.slane %v413_v8, 1  ;;  %v560_v33 = vrot.slane %v413_v8, 2  ;;  %v554_v58 = vrot.slane %v411_v55, 2  ;;  %v739_v61 = vpack.c.b16 %v737_v60, %v737_v60  ;;  %v727_v8 = vld [vmem:[%s2171_s1 + $0x8] sm:$0xf] }
  0x36   : > { %v460_v24 = vsel %vm421_vm1, %v458_v19, %v459_v20  ;;  %v561_v38 = vsel %vm522_vm0, %v559_v32, %v560_v33 }
  0x38   : > { %488 = vrot.lane.b32.xlu1 %v433_v12, %s1574_s21  ;;  %484 = vrot.lane.b32.xlu0 %v427_v13, %s1574_s21  ;;  %v575_v12 = vrot.slane %v418_v49, 2  ;;  %v1750_v13 = vsel %vm774_vm2, %v983_v3, 0  ;;  %v562_v49 = vrot.slane %v1780_v40, 2  ;;  %v555_v3 = vsel %vm522_vm0, %v553_v57, %v554_v58  ;;  %v1856_v58 = vld [vmem:[%s1619_s19 + $0xd8] sm:$0xff] }
  0x39   : > { %585 = vrot.lane.b32.xlu2 %v528_v25, %s1573_s20  ;;  %998 = vmatpush.bf16.msra.mxu2 %v1750_v13  ;;  %v1767_v25 = vld [vmem:[%s1619_s19 + $0x6c] sm:$0xff] }
  0x3a   : > { %v576_v22 = vsel %vm522_vm0, %v574_v11, %v575_v12  ;;  %v449_v34 = vrot.slane %v1767_v25, 1  ;;  %v872_v11 = vunpack.c.l.b16 %v727_v8  ;;  %v392_v12 = vunpack.c.l.b16 %v236_v10 }
  0x3c   : > { %v451_v39 = vsel %vm421_vm1, %v449_v34, %v450_v35  ;;  %v874_v15 = vpack.c.b16 %v872_v11, %v872_v11  ;;  %v412_v19 = vpack.c.b16 %v392_v12, %v392_v12 }
  0x3d   : > { %999 = vmatpush.bf16.msra.mxu2 %v1759_v16 }
  0x3e   : > { %v881_v20 = vsel %vm774_vm2, %v874_v15, 0  ;;  %v260_v15 = vld [vmem:[%s1619_s19 + $0xec] sm:$0x3] }
  0x3f   : > { %889 = vmatpush.bf16.msra.mxu1 %v881_v20 }
  0x40   : > { %494 = vrot.lane.b32.xlu1 %v442_v29, %s1574_s21  ;;  %589 = vrot.lane.b32.xlu0 %v534_v30, %s1573_s20  ;;  %v242_v29 = vld [vmem:[%s1619_s19 + $0xa4] sm:$0x3]  ;;  %v547_v30 = vrot.slane %v1739_v2, 2 }
  0x41   : > { %514 = vrot.lane.b32.xlu2 %v472_v41, %s1574_s21  ;;  %v394_v36 = vunpack.c.l.b16 %v242_v29  ;;  %v453_v29 = vrot.slane %v411_v55, 1  ;;  %v257_v55 = vld [vmem:[%s1619_s19 + $0xe0] sm:$0x3] }
  0x42   : > { %v549_v37 = vsel %vm522_vm0, %v547_v30, %v548_v31  ;;  %v399_v56 = vunpack.c.l.b16 %v257_v55 }
  0x43   : > { %v414_v41 = vpack.c.b16 %v394_v36, %v394_v36 }
  0x44   : > { %v419_v60 = vpack.c.b16 %v399_v56, %v399_v56 }
  0x45   : > { %v563_v50 = vrot.slane %v414_v41, 2  ;;  %v462_v1 = vrot.slane %v414_v41, 1 }
  0x47   : > { %v564_v53 = vsel %vm522_vm0, %v562_v49, %v563_v50 }
  0x48   : > { %615 = vrot.lane.b32.xlu1 %v573_v45, %s1573_s20  ;;  %595 = vrot.lane.b32.xlu0 %v543_v47, %s1573_s20  ;;  %v550_v45 = vrot.slane %v1767_v25, 2  ;;  %v551_v47 = vrot.slane %v410_v28, 2  ;;  %v452_v28 = vrot.slane %v1791_v54, 1 }
  0x49   : > { %496 = vrot.lane.b32.xlu2 %v445_v62, %s1574_s21  ;;  %v461_v62 = vrot.slane %v1780_v40, 1 }
  0x4a   : > { %v552_v52 = vsel %vm522_vm0, %v550_v45, %v551_v47  ;;  %v454_v30 = vsel %vm421_vm1, %v452_v28, %v453_v29  ;;  %v1885_v28 = vld [vmem:[%s1619_s19 + $0xe4] sm:$0xff] }
  0x50   : > { %597 = vrot.lane.b32.xlu1 %v546_v4, %s1573_s20  ;;  %516 = vrot.lane.b32.xlu0 %v475_v5, %s1574_s21  ;;  %v776_v4 = vsel %vm774_vm2, %v739_v61, 0  ;;  %v463_v5 = vsel %vm421_vm1, %v461_v62, %v462_v1  ;;  %v477_v1 = vrot.slane %v419_v60, 1 }
  0x51   : > { %617 = vrot.lane.b32.xlu2 %v576_v22, %s1573_s20  ;;  %1515 = vmatpush.bf16.msra.mxu3 %v776_v4  ;;  %v456_v22 = vrot.slane %v412_v19, 1 }
  0x52   : > { %784 = vmatpush.bf16.msra.mxu0 %v776_v4  ;;  %v578_v4 = vrot.slane %v419_v60, 2 }
  0x55   : > { %1516 = vmatpush.bf16.msra.mxu3 %v1513_v6 }
  0x56   : > { %785 = vmatpush.bf16.msra.mxu0 %v1513_v6 }
  0x58   : > { %498 = vrot.lane.b32.xlu0 %v448_v23, %s1574_s21  ;;  %506 = vrot.lane.b32.xlu1 %v460_v24, %s1574_s21  ;;  %v1512_v23 = vld [vmem:[%s2171_s1] sm:$0xff]  ;;  %v457_v24 = vsel %vm421_vm1, %v455_v21, %v456_v22 }
  0x59   : > { %599 = vrot.lane.b32.xlu2 %v549_v37, %s1573_s20  ;;  %1517 = vmatpush.bf16.msrb.mxu3 %v881_v20  ;;  %v556_v37 = vrot.slane %v1813_v18, 2  ;;  %v400_v20 = vunpack.c.l.b16 %v260_v15 }
  0x5a   : > { %890 = vmatpush.bf16.msra.mxu1 %v1512_v23 }
  0x5b   : > { %v420_v29 = vpack.c.b16 %v400_v20, %v400_v20 }
  0x5d   : > { %1518 = vmatpush.bf16.msrb.mxu3 %v1512_v23 }
  0x60   : > { %607 = vrot.lane.b32.xlu0 %v561_v38, %s1573_s20  ;;  %500 = vrot.lane.b32.xlu1 %v451_v39, %s1574_s21  ;;  %v557_v38 = vrot.slane %v412_v19, 2 }
  0x61   : > { %508 = vrot.lane.b32.xlu2 %v463_v5, %s1574_s21 }
  0x62   : > { %v558_v39 = vsel %vm522_vm0, %v556_v37, %v557_v38 }
  0x68   : > { %601 = vrot.lane.b32.xlu0 %v552_v52, %s1573_s20  ;;  %609 = vrot.lane.b32.xlu1 %v564_v53, %s1573_s20 }
  0x69   : > { %502 = vrot.lane.b32.xlu2 %v454_v30, %s1574_s21  ;;  %v581_v30 = vrot.slane %v420_v29, 2 }
  0x70   : > { %603 = vrot.lane.b32.xlu0 %v555_v3, %s1573_s20  ;;  %504 = vrot.lane.b32.xlu1 %v457_v24, %s1574_s21  ;;  %v577_v3 = vrot.slane %v1856_v58, 2 }
  0x71   : > { %605 = vrot.lane.b32.xlu2 %v558_v39, %s1573_s20 }
  0x72   : > { %v579_v5 = vsel %vm522_vm0, %v577_v3, %v578_v4 }
  0x73   : > { %v483_v31 = vpop.permute.xlu2 %482 }
  0x74   : > { %v626_v50 = vsel %vm623_vm3, %v1636_v17, %v483_v31 }
  0x78   : > { %619 = vrot.lane.b32.xlu1 %v579_v5, %s1573_s20 }
  0x7b   : > { %v487_v35 = vpop.permute.xlu2 %486 }
  0x7c   : > { %v632_v49 = vsel %vm623_vm3, %v1644_v26, %v487_v35 }
  0x83   : > { %v493_v47 = vpop.permute.xlu2 %492 }
  0x84   : > { %v641_v26 = vsel %vm623_vm3, %v1659_v42, %v493_v47  ;;  %v476_v42 = vrot.slane %v1856_v58, 1 }
  0x8a   : > { %v592_v32 = vpop.permute.xlu1 %591  ;;  %v491_v33 = vpop.permute.xlu0 %490 }
  0x8b   : > { %v638_v34 = vsel %vm623_vm3, %v1622_v0, %v491_v33 }
  0x8c   : > { %v1828_v36 = vsel %vm684_vm4, %v638_v34, %v592_v32 }
  0x8d   : > { %1473 = vmatmul.msk.bf16.vlgmr.msra.gmra.mxu2 %vm741_vm5, %v1828_v36 }
  0x92   : > { %v612_v41 = vpop.permute.xlu1 %611  ;;  %v511_v44 = vpop.permute.xlu0 %510 }
  0x93   : > { %v668_v0 = vsel %vm623_vm3, %v1630_v9, %v511_v44 }
  0x94   : > { %v1838_v45 = vsel %vm684_vm4, %v668_v0, %v612_v41 }
  0x95   : > { %1442 = vmatmul.msk.bf16.vlgmr.msra.gmra.mxu3 %vm741_vm5, %v1838_v45 }
  0x96   : > { %1519 = vmatpush.bf16.msra.mxu3 %v1750_v13  ;;  %v614_v13 = vpop.permute.xlu2 %613 }
  0x9a   : > { %v588_v51 = vpop.permute.xlu1 %587  ;;  %v584_v52 = vpop.permute.xlu0 %583  ;;  %1520 = vmatpush.bf16.msra.mxu3 %v1759_v16 }
  0x9b   : > { %v690_v9 = vsel %vm684_vm4, %v632_v49, %v588_v51  ;;  %v686_v53 = vsel %vm684_vm4, %v626_v50, %v584_v52  ;;  %v479_v50 = vrot.slane %v1885_v28, 1  ;;  %v480_v51 = vrot.slane %v420_v29, 1 }
  0x9c   : > { %1430 = vmatmul.msk.bf16.vlgmr.msra.gmra.mxu0 %vm741_vm5, %v690_v9  ;;  %1450 = vmatmul.msk.bf16.vlgmr.msra.gmra.mxu1 %vm741_vm5, %v686_v53 }
  0x9e   : > { %v586_v6 = vpop.permute.xlu2 %585 }
  0xa2   : > { %v594_v57 = vpop.permute.xlu1 %593  ;;  %v513_v17 = vpop.permute.xlu0 %512 }
  0xa3   : > { %v671_v16 = vsel %vm623_vm3, %v1664_v46, %v513_v17  ;;  %v1861_v61 = vsel %vm684_vm4, %v641_v26, %v594_v57  ;;  %v478_v46 = vsel %vm421_vm1, %v476_v42, %v477_v1 }
  0xa4   : > { %1474 = vmatmul.msk.bf16.gmra.mxu2 %vm741_vm5, %v1861_v61  ;;  %v1866_v62 = vsel %vm684_vm4, %v671_v16, %v614_v13  ;;  %518 = vrot.lane.b32.xlu0 %v478_v46, %s1574_s21 }
  0xa5   : > { %1443 = vmatmul.msk.bf16.gmra.mxu3 %vm741_vm5, %v1866_v62 }
  0xa6   : > { %v515_v19 = vpop.permute.xlu2 %514 }
  0xa7   : > { %v674_v32 = vsel %vm623_vm3, %v1705_v27, %v515_v19 }
  0xaa   : > { %v489_v8 = vpop.permute.xlu1 %488  ;;  %v485_v10 = vpop.permute.xlu0 %484 }
  0xab   : > { %v629_v11 = vsel %vm623_vm3, %v1681_v63, %v485_v10  ;;  %v635_v21 = vsel %vm623_vm3, %v1676_v59, %v489_v8  ;;  %v580_v63 = vrot.slane %v1885_v28, 2  ;;  %v1977_v10 = vld [vmem:[%s2172_s2] ss:$0 sm:$0xff] }
  0xac   : > { %v688_v12 = vsel %vm684_vm4, %v629_v11, %v586_v6 }
  0xad   : > { %1451 = vmatmul.msk.bf16.gmra.mxu1 %vm741_vm5, %v688_v12  ;;  %v582_v31 = vsel %vm522_vm0, %v580_v63, %v581_v30 }
  0xae   : > { %621 = vrot.lane.b32.xlu0 %v582_v31, %s1573_s20  ;;  %v497_v38 = vpop.permute.xlu2 %496 }
  0xaf   : > { %v647_v41 = vsel %vm623_vm3, %v1719_v43, %v497_v38 }
  0xb2   : > { %v495_v22 = vpop.permute.xlu1 %494  ;;  %v590_v23 = vpop.permute.xlu0 %589 }
  0xb3   : > { %v692_v24 = vsel %vm684_vm4, %v635_v21, %v590_v23  ;;  %v644_v59 = vsel %vm623_vm3, %v1694_v14, %v495_v22 }
  0xb4   : > { %1431 = vmatmul.msk.bf16.gmra.mxu0 %vm741_vm5, %v692_v24 }
  0xb6   : > { %v618_v39 = vpop.permute.xlu2 %617 }
  0xba   : > { %v616_v33 = vpop.permute.xlu1 %615  ;;  %v596_v34 = vpop.permute.xlu0 %595 }
  0xbb   : > { %v1896_v35 = vsel %vm684_vm4, %v674_v32, %v616_v33  ;;  %v698_v37 = vsel %vm684_vm4, %v644_v59, %v596_v34 }
  0xbc   : > { %1444 = vmatmul.msk.bf16.gmra.mxu3 %vm741_vm5, %v1896_v35  ;;  %1475 = vmatmul.msk.bf16.gmra.mxu2 %vm741_vm5, %v698_v37 }
  0xbd   : > { %1452 = vmatmul.msk.bf16.gmra.mxu1 %vm741_vm5, %v690_v9 }
  0xbe   : > { %v600_v13 = vpop.permute.xlu2 %599 }
  0xc2   : > { %v517_v27 = vpop.permute.xlu0 %516  ;;  %v598_v44 = vpop.permute.xlu1 %597 }
  0xc3   : > { %v677_v14 = vsel %vm623_vm3, %v1724_v48, %v517_v27  ;;  %v700_v47 = vsel %vm684_vm4, %v647_v41, %v598_v44  ;;  %v481_v48 = vsel %vm421_vm1, %v479_v50, %v480_v51 }
  0xc4   : > { %1432 = vmatmul.msk.bf16.gmra.mxu0 %vm741_vm5, %v1828_v36  ;;  %v1910_v0 = vsel %vm684_vm4, %v677_v14, %v618_v39  ;;  %520 = vrot.lane.b32.xlu2 %v481_v48, %s1574_s21 }
  0xca   : > { %v499_v49 = vpop.permute.xlu0 %498  ;;  %v507_v43 = vpop.permute.xlu1 %506 }
  0xcb   : > { %v662_v52 = vsel %vm623_vm3, %v1744_v7, %v507_v43  ;;  %v650_v53 = vsel %vm623_vm3, %v1739_v2, %v499_v49  ;;  %v509_v7 = vpop.permute.xlu2 %508 }
  0xcc   : > { %1445 = vmatmul.msk.bf16.gmra.mxu3 %vm741_vm5, %v1910_v0  ;;  %1476 = vmatmul.msk.bf16.gmra.mxu2 %vm741_vm5, %v700_v47  ;;  %v702_v26 = vsel %vm684_vm4, %v650_v53, %v600_v13  ;;  %v665_v2 = vsel %vm623_vm3, %v1780_v40, %v509_v7 }
  0xcd   : > { %1453 = vmatmul.msk.bf16.gmra.mxu1 %vm741_vm5, %v692_v24 }
  0xd2   : > { %v608_v9 = vpop.permute.xlu0 %607  ;;  %v501_v56 = vpop.permute.xlu1 %500 }
  0xd3   : > { %v1927_v55 = vsel %vm684_vm4, %v662_v52, %v608_v9  ;;  %v653_v17 = vsel %vm623_vm3, %v1767_v25, %v501_v56 }
  0xd4   : > { %1433 = vmatmul.msk.bf16.gmra.mxu0 %vm741_vm5, %v1861_v61 }
  0xda   : > { %v610_v57 = vpop.permute.xlu1 %609  ;;  %v602_v60 = vpop.permute.xlu0 %601 }
  0xdb   : > { %v1941_v16 = vsel %vm684_vm4, %v665_v2, %v610_v57  ;;  %v704_v42 = vsel %vm684_vm4, %v653_v17, %v602_v60 }
  0xdc   : > { %1462 = vmatmul.msk.bf16.vlgmr.msrb.gmra.mxu3 %vm741_vm5, %v1927_v55  ;;  %1477 = vmatmul.msk.bf16.gmra.mxu2 %vm741_vm5, %v702_v26 }
  0xdd   : > { %1454 = vmatmul.msk.bf16.gmra.mxu1 %vm741_vm5, %v1828_v36  ;;  %v503_v36 = vpop.permute.xlu2 %502 }
  0xde   : > { %v656_v25 = vsel %vm623_vm3, %v1791_v54, %v503_v36 }
  0xe2   : > { %v604_v40 = vpop.permute.xlu0 %603  ;;  %v505_v3 = vpop.permute.xlu1 %504 }
  0xe3   : > { %v1953_v1 = vsel %vm684_vm4, %v656_v25, %v604_v40 }
  0xe4   : > { %1434 = vmatmul.msk.bf16.gmra.mxu0 %vm741_vm5, %v698_v37 }
  0xe5   : > { %v606_v4 = vpop.permute.xlu2 %605 }
  0xea   : > { %v620_v41 = vpop.permute.xlu1 %619 }
  0xec   : > { %1463 = vmatmul.msk.bf16.gmra.mxu3 %vm741_vm5, %v1941_v16  ;;  %1478 = vmatmul.msk.bf16.gmra.mxu2 %vm741_vm5, %v704_v42 }
  0xed   : > { %1455 = vmatmul.msk.bf16.gmra.mxu1 %vm741_vm5, %v1861_v61  ;;  %v659_v61 = vsel %vm623_vm3, %v1813_v18, %v505_v3 }
  0xee   : > { %v1964_v54 = vsel %vm684_vm4, %v659_v61, %v606_v4 }
  0xf4   : > { %1435 = vmatmul.msk.bf16.gmra.mxu0 %vm741_vm5, %v700_v47 }
  0xfc   : > { %1464 = vmatmul.msk.bf16.gmra.mxu3 %vm741_vm5, %v1838_v45  ;;  %1479 = vmatmul.msk.bf16.gmra.mxu2 %vm741_vm5, %v1953_v1 }
  0xfd   : > { %1456 = vmatmul.msk.bf16.gmra.mxu1 %vm741_vm5, %v698_v37 }
 0x104   : > { %1436 = vmatmul.msk.bf16.gmra.mxu0 %vm741_vm5, %v702_v26 }
 0x10c   : > { %1465 = vmatmul.msk.bf16.gmra.mxu3 %vm741_vm5, %v1866_v62  ;;  %1480 = vmatmul.msk.bf16.gmra.mxu2 %vm741_vm5, %v1964_v54 }
 0x10d   : > { %1457 = vmatmul.msk.bf16.gmra.mxu1 %vm741_vm5, %v700_v47 }
 0x110   : > { %v1001_v46 = vpop.f32.mrf.mxu2 }
 0x114   : > { %1437 = vmatmul.msk.bf16.gmra.mxu0 %vm741_vm5, %v704_v42 }
 0x116   : > { %v519_v38 = vpop.permute.xlu0 %518 }
 0x117   : > { %v680_v39 = vsel %vm623_vm3, %v1856_v58, %v519_v38 }
 0x118   : > { %v1972_v5 = vpop.f32.mrf.mxu3  ;;  %v1003_v23 = vpop.f32.mrf.mxu2  ;;  %v722_v50 = vsel %vm684_vm4, %v680_v39, %v620_v41 }
 0x119   : > { %v787_v6 = vpop.f32.mrf.mxu0  ;;  %v892_v18 = vpop.f32.mrf.mxu1 }
 0x11a   : > { %v893_v8 = vadd.f32 %v892_v18, %v787_v6 }
 0x11c   : > { %v1081_v11 = vadd.f32 %v1001_v46, %v893_v8  ;;  %1481 = vmatmul.msk.bf16.gmra.mxu2 %vm741_vm5, %v1927_v55  ;;  %1485 = vmatmul.msk.bf16.vlgmr.msra.gmra.mxu3 %vm741_vm5, %v1896_v35 }
 0x11d   : > { %1458 = vmatmul.msk.bf16.gmra.mxu1 %vm741_vm5, %v702_v26 }
 0x11e   : > { %v1117_v12 = vadd.f32 %v1977_v10, %v1081_v11  ;;  %v521_v57 = vpop.permute.xlu2 %520 }
 0x11f   : > { %v683_v60 = vsel %vm623_vm3, %v1885_v28, %v521_v57 }
 0x120   : > { %v1149_v15 = vmax.f32 %v1117_v12, 0.0  ;;  %v1991_v24 = vpop.f32.mrf.mxu3 }
 0x121   : > { %v789_v19 = vpop.f32.mrf.mxu0  ;;  %v894_v20 = vpop.f32.mrf.mxu1 }
 0x122   : > { %v1181_v21 = vpack.c.bf16 %v1149_v15, %v1149_v15  ;;  %v895_v22 = vadd.f32 %v894_v20, %v789_v19 }
 0x124   : > { %1214 = vst.msk [vmem:[%s1989_s16] sm:$0xf] %vm1213_vm6, %v1181_v21  ;;  %v1082_v29 = vadd.f32 %v1003_v23, %v895_v22  ;;  %1438 = vmatmul.msk.bf16.gmra.mxu0 %vm741_vm5, %v1953_v1 }
 0x126   : > { %v1118_v63 = vadd.f32 %v1977_v10, %v1082_v29 }
 0x127   : > { %v1006_v59 = vpop.f32.mrf.mxu2 }
 0x128   : > { %v1150_v30 = vmax.f32 %v1118_v63, 0.0  ;;  %v2004_v33 = vpop.f32.mrf.mxu3 }
 0x12a   : > { %v1182_v31 = vpack.c.bf16 %v1150_v30, %v1150_v30  ;;  %v897_v32 = vpop.f32.mrf.mxu1 }
 0x12c   : > { %1215 = vst.msk [vmem:[%s1989_s16 + $0x4] sm:$0xf] %vm1213_vm6, %v1182_v31  ;;  %1482 = vmatmul.msk.bf16.gmra.mxu2 %vm741_vm5, %v1941_v16  ;;  %1486 = vmatmul.msk.bf16.gmra.mxu3 %vm741_vm5, %v1910_v0 }
 0x12d   : > { %1459 = vmatmul.msk.bf16.gmra.mxu1 %vm741_vm5, %v704_v42  ;;  %v622_v42 = vpop.permute.xlu0 %621 }
 0x12e   : > { %v724_v3 = vsel %vm684_vm4, %v683_v60, %v622_v42 }
 0x12f   : > { %v1008_v44 = vpop.f32.mrf.mxu2 }
 0x130   : > { %v2012_v0 = vpop.f32.mrf.mxu3 }
 0x131   : > { %v792_v34 = vpop.f32.mrf.mxu0 }
 0x132   : > { %v898_v35 = vadd.f32 %v897_v32, %v792_v34  ;;  %v899_v37 = vpop.f32.mrf.mxu1 }
 0x134   : > { %v1083_v27 = vadd.f32 %v1006_v59, %v898_v35  ;;  %1439 = vmatmul.msk.bf16.gmra.mxu0 %vm741_vm5, %v1964_v54 }
 0x136   : > { %v1119_v14 = vadd.f32 %v1977_v10, %v1083_v27 }
 0x138   : > { %v1151_v47 = vmax.f32 %v1119_v14, 0.0 }
 0x139   : > { %v794_v49 = vpop.f32.mrf.mxu0 }
 0x13a   : > { %v1183_v51 = vpack.c.bf16 %v1151_v47, %v1151_v47  ;;  %v900_v48 = vadd.f32 %v899_v37, %v794_v49  ;;  %v902_v43 = vpop.f32.mrf.mxu1 }
 0x13c   : > { %1216 = vst.msk [vmem:[%s1989_s16 + $0x8] sm:$0xf] %vm1213_vm6, %v1183_v51  ;;  %v1084_v52 = vadd.f32 %v1008_v44, %v900_v48  ;;  %1483 = vmatmul.msk.bf16.gmra.mxu2 %vm741_vm5, %v1838_v45  ;;  %1487 = vmatmul.msk.bf16.gmra.mxu3 %vm741_vm5, %v722_v50 }
 0x13d   : > { %1460 = vmatmul.msk.bf16.gmra.mxu1 %vm741_vm5, %v1953_v1 }
 0x13e   : > { %v1120_v58 = vadd.f32 %v1977_v10, %v1084_v52 }
 0x13f   : > { %v2023_v9 = vpop.f32.mrf.mxu3  ;;  %v1011_v53 = vpop.f32.mrf.mxu2 }
 0x140   : > { %v1152_v13 = vmax.f32 %v1120_v58, 0.0 }
 0x141   : > { %v797_v26 = vpop.f32.mrf.mxu0 }
 0x142   : > { %v1184_v56 = vpack.c.bf16 %v1152_v13, %v1152_v13  ;;  %v903_v7 = vadd.f32 %v902_v43, %v797_v26  ;;  %v904_v2 = vpop.f32.mrf.mxu1 }
 0x144   : > { %1217 = vst.msk [vmem:[%s1989_s16 + $0xc] sm:$0xf] %vm1213_vm6, %v1184_v56  ;;  %v1085_v45 = vadd.f32 %v1011_v53, %v903_v7  ;;  %1440 = vmatmul.msk.bf16.gmra.mxu0 %vm741_vm5, %v1927_v55 }
 0x146   : > { %v1121_v17 = vadd.f32 %v1977_v10, %v1085_v45 }
 0x147   : > { %v2032_v36 = vpop.f32.mrf.mxu3  ;;  %v1013_v25 = vpop.f32.mrf.mxu2 }
 0x148   : > { %v1153_v40 = vmax.f32 %v1121_v17, 0.0 }
 0x149   : > { %v799_v1 = vpop.f32.mrf.mxu0 }
 0x14a   : > { %v1185_v61 = vpack.c.bf16 %v1153_v40, %v1153_v40  ;;  %v905_v4 = vadd.f32 %v904_v2, %v799_v1  ;;  %v907_v46 = vpop.f32.mrf.mxu1 }
 0x14c   : > { %1218 = vst.msk [vmem:[%s1989_s16 + $0x10] sm:$0xf] %vm1213_vm6, %v1185_v61  ;;  %v1086_v55 = vadd.f32 %v1013_v25, %v905_v4  ;;  %1484 = vmatmul.msk.bf16.gmra.mxu2 %vm741_vm5, %v1866_v62  ;;  %1488 = vmatmul.msk.bf16.gmra.mxu3 %vm741_vm5, %v724_v3 }
 0x14d   : > { %1461 = vmatmul.msk.bf16.gmra.mxu1 %vm741_vm5, %v1964_v54 }
 0x14e   : > { %v1122_v28 = vadd.f32 %v1977_v10, %v1086_v55 }
 0x14f   : > { %v2043_v6 = vpop.f32.mrf.mxu3  ;;  %v1016_v18 = vpop.f32.mrf.mxu2 }
 0x150   : > { %v1154_v8 = vmax.f32 %v1122_v28, 0.0 }
 0x151   : > { %v802_v11 = vpop.f32.mrf.mxu0 }
 0x152   : > { %v1186_v12 = vpack.c.bf16 %v1154_v8, %v1154_v8  ;;  %v908_v15 = vadd.f32 %v907_v46, %v802_v11  ;;  %v909_v19 = vpop.f32.mrf.mxu1 }
 0x154   : > { %1219 = vst.msk [vmem:[%s1989_s16 + $0x14] sm:$0xf] %vm1213_vm6, %v1186_v12  ;;  %v1087_v20 = vadd.f32 %v1016_v18, %v908_v15  ;;  %1441 = vmatmul.msk.bf16.gmra.mxu0 %vm741_vm5, %v1941_v16 }
 0x156   : > { %v1123_v62 = vadd.f32 %v1977_v10, %v1087_v20 }
 0x157   : > { %v2050_v54 = vpop.f32.mrf.mxu3  ;;  %v1018_v21 = vpop.f32.mrf.mxu2 }
 0x158   : > { %v1155_v22 = vmax.f32 %v1123_v62, 0.0 }
 0x159   : > { %v804_v23 = vpop.f32.mrf.mxu0 }
 0x15a   : > { %v1187_v29 = vpack.c.bf16 %v1155_v22, %v1155_v22  ;;  %v910_v63 = vadd.f32 %v909_v19, %v804_v23  ;;  %v912_v30 = vpop.f32.mrf.mxu1 }
 0x15c   : > { %1220 = vst.msk [vmem:[%s1989_s16 + $0x18] sm:$0xf] %vm1213_vm6, %v1187_v29  ;;  %v1088_v31 = vadd.f32 %v1018_v21, %v910_v63 }
 0x15e   : > { %v1124_v32 = vadd.f32 %v1977_v10, %v1088_v31 }
 0x15f   : > { %v2055_v59 = vpop.f32.mrf.mxu3  ;;  %v1021_v34 = vpop.f32.mrf.mxu2 }
 0x160   : > { %v1156_v16 = vmax.f32 %v1124_v32, 0.0 }
 0x161   : > { %v807_v35 = vpop.f32.mrf.mxu0 }
 0x162   : > { %v1188_v37 = vpack.c.bf16 %v1156_v16, %v1156_v16  ;;  %v913_v38 = vadd.f32 %v912_v30, %v807_v35  ;;  %v914_v27 = vpop.f32.mrf.mxu1 }
 0x164   : > { %1221 = vst.msk [vmem:[%s1989_s16 + $0x1c] sm:$0xf] %vm1213_vm6, %v1188_v37  ;;  %v1089_v14 = vadd.f32 %v1021_v34, %v913_v38 }
 0x166   : > { %v1125_v39 = vadd.f32 %v1977_v10, %v1089_v14 }
 0x167   : > { %v2060_v41 = vpop.f32.mrf.mxu3  ;;  %v1023_v44 = vpop.f32.mrf.mxu2 }
 0x168   : > { %v1157_v47 = vmax.f32 %v1125_v39, 0.0 }
 0x169   : > { %v809_v49 = vpop.f32.mrf.mxu0 }
 0x16a   : > { %v1189_v50 = vpack.c.bf16 %v1157_v47, %v1157_v47  ;;  %v915_v51 = vadd.f32 %v914_v27, %v809_v49  ;;  %v917_v48 = vpop.f32.mrf.mxu1 }
 0x16c   : > { %1222 = vst.msk [vmem:[%s1989_s16 + $0x20] sm:$0xf] %vm1213_vm6, %v1189_v50  ;;  %v1090_v43 = vadd.f32 %v1023_v44, %v915_v51 }
 0x16e   : > { %v1126_v52 = vadd.f32 %v1977_v10, %v1090_v43 }
 0x16f   : > { %v2065_v58 = vpop.f32.mrf.mxu3  ;;  %v1026_v53 = vpop.f32.mrf.mxu2 }
 0x170   : > { %v1158_v13 = vmax.f32 %v1126_v52, 0.0 }
 0x171   : > { %v812_v26 = vpop.f32.mrf.mxu0 }
 0x172   : > { %v1190_v56 = vpack.c.bf16 %v1158_v13, %v1158_v13  ;;  %v918_v7 = vadd.f32 %v917_v48, %v812_v26  ;;  %v919_v2 = vpop.f32.mrf.mxu1 }
 0x174   : > { %1223 = vst.msk [vmem:[%s1989_s16 + $0x24] sm:$0xf] %vm1213_vm6, %v1190_v56  ;;  %v1091_v57 = vadd.f32 %v1026_v53, %v918_v7  ;;  %v953_v53 = vadd.f32 %v2055_v59, %v1972_v5  ;;  %v955_v5 = vadd.f32 %v2060_v41, %v1991_v24 }
 0x176   : > { %v1127_v45 = vadd.f32 %v1977_v10, %v1091_v57 }
 0x177   : > { %v2070_v17 = vpop.f32.mrf.mxu3  ;;  %v1028_v60 = vpop.f32.mrf.mxu2 }
 0x178   : > { %v1159_v42 = vmax.f32 %v1127_v45, 0.0 }
 0x179   : > { %v814_v25 = vpop.f32.mrf.mxu0 }
 0x17a   : > { %v1191_v40 = vpack.c.bf16 %v1159_v42, %v1159_v42  ;;  %v920_v1 = vadd.f32 %v919_v2, %v814_v25  ;;  %v922_v3 = vpop.f32.mrf.mxu1 }
 0x17c   : > { %1224 = vst.msk [vmem:[%s1989_s16 + $0x28] sm:$0xf] %vm1213_vm6, %v1191_v40  ;;  %v1092_v61 = vadd.f32 %v1028_v60, %v920_v1 }
 0x17e   : > { %v1128_v4 = vadd.f32 %v1977_v10, %v1092_v61 }
 0x17f   : > { %v2075_v46 = vpop.f32.mrf.mxu3  ;;  %v1031_v55 = vpop.f32.mrf.mxu2 }
 0x180   : > { %v1160_v28 = vmax.f32 %v1128_v4, 0.0 }
 0x181   : > { %v817_v18 = vpop.f32.mrf.mxu0 }
 0x182   : > { %v1192_v8 = vpack.c.bf16 %v1160_v28, %v1160_v28  ;;  %v923_v11 = vadd.f32 %v922_v3, %v817_v18  ;;  %v924_v12 = vpop.f32.mrf.mxu1 }
 0x184   : > { %1225 = vst.msk [vmem:[%s1989_s16 + $0x2c] sm:$0xf] %vm1213_vm6, %v1192_v8  ;;  %v1093_v15 = vadd.f32 %v1031_v55, %v923_v11 }
 0x186   : > { %v1129_v19 = vadd.f32 %v1977_v10, %v1093_v15 }
 0x187   : > { %v2080_v20 = vpop.f32.mrf.mxu3  ;;  %v1033_v62 = vpop.f32.mrf.mxu2 }
 0x188   : > { %v1161_v21 = vmax.f32 %v1129_v19, 0.0  ;;  %v958_v19 = vadd.f32 %v2065_v58, %v2004_v33 }
 0x189   : > { %v819_v22 = vpop.f32.mrf.mxu0 }
 0x18a   : > { %v1193_v23 = vpack.c.bf16 %v1161_v21, %v1161_v21  ;;  %v925_v29 = vadd.f32 %v924_v12, %v819_v22  ;;  %v927_v63 = vpop.f32.mrf.mxu1 }
 0x18c   : > { %1226 = vst.msk [vmem:[%s1989_s16 + $0x30] sm:$0xf] %vm1213_vm6, %v1193_v23  ;;  %v1094_v30 = vadd.f32 %v1033_v62, %v925_v29 }
 0x18e   : > { %v1130_v31 = vadd.f32 %v1977_v10, %v1094_v30 }
 0x18f   : > { %v2085_v32 = vpop.f32.mrf.mxu3  ;;  %v1036_v34 = vpop.f32.mrf.mxu2 }
 0x190   : > { %v1162_v16 = vmax.f32 %v1130_v31, 0.0 }
 0x191   : > { %v822_v35 = vpop.f32.mrf.mxu0 }
 0x192   : > { %v1194_v37 = vpack.c.bf16 %v1162_v16, %v1162_v16  ;;  %v928_v38 = vadd.f32 %v927_v63, %v822_v35  ;;  %v929_v27 = vpop.f32.mrf.mxu1 }
 0x194   : > { %1227 = vst.msk [vmem:[%s1989_s16 + $0x34] sm:$0xf] %vm1213_vm6, %v1194_v37  ;;  %v1095_v14 = vadd.f32 %v1036_v34, %v928_v38  ;;  %v960_v37 = vadd.f32 %v2070_v17, %v2012_v0 }
 0x196   : > { %v1131_v39 = vadd.f32 %v1977_v10, %v1095_v14 }
 0x197   : > { %v2090_v44 = vpop.f32.mrf.mxu3  ;;  %v1038_v47 = vpop.f32.mrf.mxu2 }
 0x198   : > { %v1163_v49 = vmax.f32 %v1131_v39, 0.0 }
 0x199   : > { %v824_v50 = vpop.f32.mrf.mxu0 }
 0x19a   : > { %v1195_v51 = vpack.c.bf16 %v1163_v49, %v1163_v49  ;;  %v930_v48 = vadd.f32 %v929_v27, %v824_v50  ;;  %v932_v43 = vpop.f32.mrf.mxu1 }
 0x19c   : > { %1228 = vst.msk [vmem:[%s1989_s16 + $0x38] sm:$0xf] %vm1213_vm6, %v1195_v51  ;;  %v1096_v52 = vadd.f32 %v1038_v47, %v930_v48 }
 0x19e   : > { %v1132_v13 = vadd.f32 %v1977_v10, %v1096_v52 }
 0x19f   : > { %v1041_v26 = vpop.f32.mrf.mxu2  ;;  %v1061_v56 = vpop.f32.mrf.mxu3 }
 0x1a0   : > { %v1164_v7 = vmax.f32 %v1132_v13, 0.0  ;;  %v1105_v2 = vadd.f32 %v1061_v56, %v953_v53  ;;  %v963_v53 = vadd.f32 %v2075_v46, %v2023_v9 }
 0x1a1   : > { %v827_v57 = vpop.f32.mrf.mxu0 }
 0x1a2   : > { %v1196_v45 = vpack.c.bf16 %v1164_v7, %v1164_v7  ;;  %v1141_v60 = vadd.f32 %v1977_v10, %v1105_v2  ;;  %v933_v42 = vadd.f32 %v932_v43, %v827_v57  ;;  %v934_v25 = vpop.f32.mrf.mxu1 }
 0x1a4   : > { %1229 = vst.msk [vmem:[%s1989_s16 + $0x3c] sm:$0xf] %vm1213_vm6, %v1196_v45  ;;  %v1173_v40 = vmax.f32 %v1141_v60, 0.0  ;;  %v1097_v1 = vadd.f32 %v1041_v26, %v933_v42 }
 0x1a6   : > { %v1205_v59 = vpack.c.bf16 %v1173_v40, %v1173_v40  ;;  %v1133_v3 = vadd.f32 %v1977_v10, %v1097_v1  ;;  %v965_v1 = vadd.f32 %v2080_v20, %v2032_v36  ;;  %v968_v20 = vadd.f32 %v2085_v32, %v2043_v6 }
 0x1a7   : > { %v1043_v61 = vpop.f32.mrf.mxu2  ;;  %v1063_v4 = vpop.f32.mrf.mxu3 }
 0x1a8   : > { %1238 = vst.msk [vmem:[%s1989_s16 + $0x60] sm:$0xf] %vm1213_vm6, %v1205_v59  ;;  %v1165_v55 = vmax.f32 %v1133_v3, 0.0  ;;  %v1106_v28 = vadd.f32 %v1063_v4, %v955_v5 }
 0x1a9   : > { %v829_v18 = vpop.f32.mrf.mxu0 }
 0x1aa   : > { %v1197_v8 = vpack.c.bf16 %v1165_v55, %v1165_v55  ;;  %v1142_v11 = vadd.f32 %v1977_v10, %v1106_v28  ;;  %v935_v12 = vadd.f32 %v934_v25, %v829_v18  ;;  %v937_v15 = vpop.f32.mrf.mxu1 }
 0x1ac   : > { %1230 = vst.msk [vmem:[%s1989_s16 + $0x40] sm:$0xf] %vm1213_vm6, %v1197_v8  ;;  %v1174_v24 = vmax.f32 %v1142_v11, 0.0  ;;  %v1098_v41 = vadd.f32 %v1043_v61, %v935_v12 }
 0x1ae   : > { %v1206_v62 = vpack.c.bf16 %v1174_v24, %v1174_v24  ;;  %v1134_v21 = vadd.f32 %v1977_v10, %v1098_v41 }
 0x1af   : > { %v1046_v22 = vpop.f32.mrf.mxu2  ;;  %v1066_v23 = vpop.f32.mrf.mxu3 }
 0x1b0   : > { %1239 = vst.msk [vmem:[%s1989_s16 + $0x64] sm:$0xf] %vm1213_vm6, %v1206_v62  ;;  %v1166_v29 = vmax.f32 %v1134_v21, 0.0  ;;  %v1107_v63 = vadd.f32 %v1066_v23, %v958_v19 }
 0x1b1   : > { %v832_v30 = vpop.f32.mrf.mxu0 }
 0x1b2   : > { %v1198_v31 = vpack.c.bf16 %v1166_v29, %v1166_v29  ;;  %v1143_v34 = vadd.f32 %v1977_v10, %v1107_v63  ;;  %v938_v16 = vadd.f32 %v937_v15, %v832_v30  ;;  %v939_v35 = vpop.f32.mrf.mxu1 }
 0x1b4   : > { %1231 = vst.msk [vmem:[%s1989_s16 + $0x44] sm:$0xf] %vm1213_vm6, %v1198_v31  ;;  %v1175_v33 = vmax.f32 %v1143_v34, 0.0  ;;  %v1099_v58 = vadd.f32 %v1046_v22, %v938_v16  ;;  %v970_v31 = vadd.f32 %v2090_v44, %v2050_v54 }
 0x1b6   : > { %v1207_v38 = vpack.c.bf16 %v1175_v33, %v1175_v33  ;;  %v1135_v27 = vadd.f32 %v1977_v10, %v1099_v58 }
 0x1b7   : > { %v1048_v14 = vpop.f32.mrf.mxu2  ;;  %v1068_v39 = vpop.f32.mrf.mxu3 }
 0x1b8   : > { %1240 = vst.msk [vmem:[%s1989_s16 + $0x68] sm:$0xf] %vm1213_vm6, %v1207_v38  ;;  %v1167_v47 = vmax.f32 %v1135_v27, 0.0  ;;  %v1108_v49 = vadd.f32 %v1068_v39, %v960_v37 }
 0x1b9   : > { %v834_v50 = vpop.f32.mrf.mxu0 }
 0x1ba   : > { %v1199_v51 = vpack.c.bf16 %v1167_v47, %v1167_v47  ;;  %v1144_v48 = vadd.f32 %v1977_v10, %v1108_v49  ;;  %v940_v43 = vadd.f32 %v939_v35, %v834_v50  ;;  %v942_v52 = vpop.f32.mrf.mxu1 }
 0x1bc   : > { %1232 = vst.msk [vmem:[%s1989_s16 + $0x48] sm:$0xf] %vm1213_vm6, %v1199_v51  ;;  %v1176_v0 = vmax.f32 %v1144_v48, 0.0  ;;  %v1100_v17 = vadd.f32 %v1048_v14, %v940_v43 }
 0x1be   : > { %v1208_v13 = vpack.c.bf16 %v1176_v0, %v1176_v0  ;;  %v1136_v26 = vadd.f32 %v1977_v10, %v1100_v17 }
 0x1bf   : > { %v1051_v56 = vpop.f32.mrf.mxu2  ;;  %v1071_v7 = vpop.f32.mrf.mxu3 }
 0x1c0   : > { %1241 = vst.msk [vmem:[%s1989_s16 + $0x6c] sm:$0xf] %vm1213_vm6, %v1208_v13  ;;  %v1168_v2 = vmax.f32 %v1136_v26, 0.0  ;;  %v1109_v57 = vadd.f32 %v1071_v7, %v963_v53 }
 0x1c1   : > { %v837_v45 = vpop.f32.mrf.mxu0 }
 0x1c2   : > { %v1200_v60 = vpack.c.bf16 %v1168_v2, %v1168_v2  ;;  %v1145_v42 = vadd.f32 %v1977_v10, %v1109_v57  ;;  %v943_v25 = vadd.f32 %v942_v52, %v837_v45  ;;  %v944_v46 = vpop.f32.mrf.mxu1 }
 0x1c4   : > { %1233 = vst.msk [vmem:[%s1989_s16 + $0x4c] sm:$0xf] %vm1213_vm6, %v1200_v60  ;;  %v1177_v40 = vmax.f32 %v1145_v42, 0.0  ;;  %v1101_v9 = vadd.f32 %v1051_v56, %v943_v25 }
 0x1c6   : > { %v1209_v5 = vpack.c.bf16 %v1177_v40, %v1177_v40  ;;  %v1137_v59 = vadd.f32 %v1977_v10, %v1101_v9 }
 0x1c7   : > { %v1053_v3 = vpop.f32.mrf.mxu2  ;;  %v1073_v61 = vpop.f32.mrf.mxu3 }
 0x1c8   : > { %1242 = vst.msk [vmem:[%s1989_s16 + $0x70] sm:$0xf] %vm1213_vm6, %v1209_v5  ;;  %v1169_v4 = vmax.f32 %v1137_v59, 0.0  ;;  %v1110_v55 = vadd.f32 %v1073_v61, %v965_v1 }
 0x1c9   : > { %v839_v28 = vpop.f32.mrf.mxu0 }
 0x1ca   : > { %v1201_v18 = vpack.c.bf16 %v1169_v4, %v1169_v4  ;;  %v1146_v8 = vadd.f32 %v1977_v10, %v1110_v55  ;;  %v945_v11 = vadd.f32 %v944_v46, %v839_v28  ;;  %v947_v41 = vpop.f32.mrf.mxu1 }
 0x1cc   : > { %1234 = vst.msk [vmem:[%s1989_s16 + $0x50] sm:$0xf] %vm1213_vm6, %v1201_v18  ;;  %v1178_v12 = vmax.f32 %v1146_v8, 0.0  ;;  %v1102_v36 = vadd.f32 %v1053_v3, %v945_v11 }
 0x1ce   : > { %v1210_v15 = vpack.c.bf16 %v1178_v12, %v1178_v12  ;;  %v1138_v24 = vadd.f32 %v1977_v10, %v1102_v36 }
 0x1cf   : > { %v1076_v19 = vpop.f32.mrf.mxu3  ;;  %v1056_v22 = vpop.f32.mrf.mxu2 }
 0x1d0   : > { %1243 = vst.msk [vmem:[%s1989_s16 + $0x74] sm:$0xf] %vm1213_vm6, %v1210_v15  ;;  %v1170_v62 = vmax.f32 %v1138_v24, 0.0  ;;  %v1111_v21 = vadd.f32 %v1076_v19, %v968_v20 }
 0x1d1   : > { %v842_v23 = vpop.f32.mrf.mxu0 }
 0x1d2   : > { %v1202_v29 = vpack.c.bf16 %v1170_v62, %v1170_v62  ;;  %v1147_v63 = vadd.f32 %v1977_v10, %v1111_v21  ;;  %v948_v30 = vadd.f32 %v947_v41, %v842_v23  ;;  %v949_v37 = vpop.f32.mrf.mxu1 }
 0x1d4   : > { %1235 = vst.msk [vmem:[%s1989_s16 + $0x54] sm:$0xf] %vm1213_vm6, %v1202_v29  ;;  %v1179_v6 = vmax.f32 %v1147_v63, 0.0  ;;  %v1103_v32 = vadd.f32 %v1056_v22, %v948_v30 }
 0x1d6   : > { %v1211_v34 = vpack.c.bf16 %v1179_v6, %v1179_v6  ;;  %v1139_v16 = vadd.f32 %v1977_v10, %v1103_v32 }
 0x1d7   : > { %v1078_v35 = vpop.f32.mrf.mxu3  ;;  %v1058_v47 = vpop.f32.mrf.mxu2 }
 0x1d8   : > { %1244 = vst.msk [vmem:[%s1989_s16 + $0x78] sm:$0xf] %vm1213_vm6, %v1211_v34  ;;  %v1171_v33 = vmax.f32 %v1139_v16, 0.0  ;;  %v1112_v58 = vadd.f32 %v1078_v35, %v970_v31 }
 0x1d9   : > { %v844_v38 = vpop.f32.mrf.mxu0 }
 0x1da   : > { %v1203_v27 = vpack.c.bf16 %v1171_v33, %v1171_v33  ;;  %v1148_v14 = vadd.f32 %v1977_v10, %v1112_v58  ;;  %v950_v39 = vadd.f32 %v949_v37, %v844_v38 }
 0x1dc   : > { %1236 = vst.msk [vmem:[%s1989_s16 + $0x58] sm:$0xf] %vm1213_vm6, %v1203_v27  ;;  %v1180_v54 = vmax.f32 %v1148_v14, 0.0  ;;  %v1104_v44 = vadd.f32 %v1058_v47, %v950_v39 }
 0x1de   : > { %v1212_v49 = vpack.c.bf16 %v1180_v54, %v1180_v54  ;;  %v1140_v50 = vadd.f32 %v1977_v10, %v1104_v44 }
 0x1e0   : > { %1245 = vst.msk [vmem:[%s1989_s16 + $0x7c] sm:$0xf] %vm1213_vm6, %v1212_v49  ;;  %v1172_v51 = vmax.f32 %v1140_v50, 0.0 }
 0x1e2   : > { %v1204_v48 = vpack.c.bf16 %v1172_v51, %v1172_v51 }
 0x1e4   : > { %1237 = vst.msk [vmem:[%s1989_s16 + $0x5c] sm:$0xf] %vm1213_vm6, %v1204_v48 }
 0x1e5 PF: > { %s13_s14 = sadd.s32 1, %s1571_s14   ;;  %s2174_s12 = smov %s1567_s13 }
 0x1e6   : > { %p10_p5 = scmp.ge.s32.totalorder %s13_s14, 4   ;;  %s2175_s13 = smov %s2177_s15 }
 0x1e8   :  { %12 = sbr.rel (!%p10_p5) target bundleno = 2 (0x2), region = 65 }

</bundles_post_ra>
